<compile_context>
chip_gen: v7x
topology: tpu7x:2x2x1
jax: 0.10.0
libtpu: 0.0.40
codegen_flags: <defaults>
</compile_context>

<pallas_src>
import functools
import math

import numpy as np
import jax
import jax.numpy as jnp
from jax.experimental import pallas as pl
from jax.experimental.pallas import tpu as pltpu

WINDOW_SIZE = 11
SIGMA = 1.5
C1 = 0.01 ** 2
C2 = 0.03 ** 2
_LANE = 128


def _gaussian_1d(window_size=WINDOW_SIZE, sigma=SIGMA):
    g = np.array(
        [math.exp(-((x - window_size // 2) ** 2) / float(2 * sigma ** 2))
         for x in range(window_size)], dtype=np.float64)
    return (g / g.sum()).astype(np.float32)


def _gaussian_window_2d():
    g = _gaussian_1d()
    return np.outer(g, g).astype(np.float32)


_W2D = _gaussian_window_2d()


@functools.lru_cache(maxsize=None)
def _band_matrix(n, valid, window_size=WINDOW_SIZE, sigma=SIGMA):
    """(n, n) banded Gaussian matrix, band clipped to the leading `valid` rows/cols.

    Multiplying a plane by this matrix performs the 1-D Gaussian convolution
    *including* the implicit zero padding of F.conv2d(padding=window_size//2):
    out-of-range taps have no column -> contribute zero.  Rows/cols >= `valid`
    are zero so width-padded lanes never bleed into (or out of) real outputs.
    """
    g = _gaussian_1d(window_size, sigma)
    half = window_size // 2
    m = np.zeros((n, n), dtype=np.float32)
    for i in range(valid):
        lo, hi = max(0, i - half), min(valid, i + half + 1)
        m[i, lo:hi] = g[lo - i + half:hi - i + half]
    return m


@functools.lru_cache(maxsize=None)
def _row_band(W, Wp, G, window_size=WINDOW_SIZE):
    """Row-direction band: block-diag over the G lane-packed planes only."""
    b = _band_matrix(Wp, W, window_size)
    if G == 1:
        return b
    return np.kron(np.eye(G, dtype=np.float32), b)


def _choose_group(P, W):
    """Pick (G planes per block, padded plane width Wp) for lane-dense blocks."""
    if W % _LANE == 0:
        return 1, W                          # already lane-dense per plane
    if _LANE % W == 0:
        if P * W <= _LANE:
            return P, W                      # single block == full array (always legal)
        for lanes in (2 * _LANE, _LANE):     # prefer 256-wide blocks for v6e/v7x MXU
            gpl = lanes // W
            if P % gpl == 0:
                return gpl, W
        return _LANE // W, W                 # pad plane count up to a full group
    # W neither a multiple nor a divisor of 128: pad each plane's width.
    return 1, -(-W // _LANE) * _LANE


def ssim_kernel(a_ref, b_ref, x1_ref, x2_ref, map_ref):
    # a_ref   : (H, H)    column-direction Gaussian band (grid-constant)
    # b_ref   : (gw, gw)  row-direction Gaussian band (block-diag over planes)
    # x*_ref  : (H, gw)   lane-stacked planes for this group
    # map_ref : (H, gw)   SSIM map for this group (lane-dense)
    x1 = x1_ref[...]
    x2 = x2_ref[...]
    a = a_ref[...]
    b = b_ref[...]
    hp = jax.lax.Precision.HIGHEST  # sigma = E[x^2] - mu^2 cancels; keep fp32

    def gconv(s):
        # Separable 11x11 Gaussian conv (with conv2d zero padding) as two
        # per-statistic MXU matmuls: column pass then row pass.
        t = jnp.dot(a, s, precision=hp, preferred_element_type=jnp.float32)
        return jnp.dot(t, b, precision=hp, preferred_element_type=jnp.float32)

    mu1 = gconv(x1)
    mu2 = gconv(x2)
    e11 = gconv(x1 * x1)
    e22 = gconv(x2 * x2)
    e12 = gconv(x1 * x2)

    mu1_sq = mu1 * mu1
    mu2_sq = mu2 * mu2
    mu1_mu2 = mu1 * mu2
    sigma1_sq = e11 - mu1_sq
    sigma2_sq = e22 - mu2_sq
    sigma12 = e12 - mu1_mu2

    num = (2.0 * mu1_mu2 + C1) * (2.0 * sigma12 + C2)
    den = (mu1_sq + mu2_sq + C1) * (sigma1_sq + sigma2_sq + C2)
    # Exact divide on purpose (pl.reciprocal(approx=True) drifts ~1e-3 rel).
    map_ref[...] = num / den


@functools.partial(jax.jit, static_argnums=(2, 3, 4))
def _ssim_pallas_jit(img1, img2, window_size, size_average, return_map):
    B, C, H, W = img1.shape
    P = B * C
    G, Wp = _choose_group(P, W)
    gw = G * Wp
    num_groups = -(-P // G)
    Ppad = num_groups * G

    # Lane-stack planes: (B, C, H, W) -> (H, Ppad*Wp).  Layout plumbing so each
    # kernel block is lane-dense (unmasked vst) and planes batch on the MXU.
    # TODO(synk): for large images, replace this XLA transpose (an extra HBM
    # pass) with in-kernel per-plane DMA gather (memory_space=pl.ANY inputs).
    def stack(x):
        x = x.astype(jnp.float32)
        if Wp != W:
            x = jnp.pad(x, ((0, 0), (0, 0), (0, 0), (0, Wp - W)))
        x = jnp.transpose(x, (2, 0, 1, 3)).reshape(H, P * Wp)
        if Ppad != P:
            x = jnp.pad(x, ((0, 0), (0, (Ppad - P) * Wp)))
        return x

    x1s, x2s = stack(img1), stack(img2)

    a_band = jnp.asarray(_band_matrix(H, H, window_size))
    b_band = jnp.asarray(_row_band(W, Wp, G, window_size))

    # Explicit scoped-VMEM limit: double-buffered blocks + slack.  The constant
    # bands are small now that the 5-statistic kron is gone, so their default
    # double-buffering is cheap (single-buffering them is a further option).
    block_bytes = 4 * (H * H + gw * gw + 3 * H * gw)
    vmem_limit = int(min(max(4 * block_bytes, 32 << 20), 64 << 20))

    # TODO(synk): for very large H, strip-tile H with a 10-row halo (rectangular
    # (TH, TH+10) band slab) so blocks fit v7x's 64 MiB VMEM and the two
    # TensorCores get a second parallel axis even when num_groups == 1.
    ssim_flat = pl.pallas_call(
        ssim_kernel,
        out_shape=jax.ShapeDtypeStruct((H, Ppad * Wp), jnp.float32),
        grid=(num_groups,),
        in_specs=[
            pl.BlockSpec((H, H), lambda i: (0, 0)),
            pl.BlockSpec((gw, gw), lambda i: (0, 0)),
            pl.BlockSpec((H, gw), lambda i: (0, i)),
            pl.BlockSpec((H, gw), lambda i: (0, i)),
        ],
        out_specs=pl.BlockSpec((H, gw), lambda i: (0, i)),
        compiler_params=pltpu.CompilerParams(
            dimension_semantics=("parallel",),
            vmem_limit_bytes=vmem_limit),
    )(a_band, b_band, x1s, x2s)

    # Reduce directly on the lane-stacked map (no un-transpose pass); slice off
    # padded planes/columns first (their SSIM is exactly 1 and must not leak
    # into the mean).
    valid = ssim_flat.reshape(H, Ppad, Wp)[:, :P, :W]          # (H, B*C, W)
    if size_average:
        mean = jnp.mean(valid)
    else:
        mean = jnp.mean(valid.reshape(H, B, C, W), axis=(0, 2, 3))

    if return_map:
        ssim_map = jnp.transpose(valid.reshape(H, B, C, W), (1, 2, 0, 3))
        return mean, ssim_map
    return mean


def ssim_pallas(img1, img2, window_size=WINDOW_SIZE, size_average=True,
                return_map=False):
    """Matches SSIM(window_size, size_average)(img1, img2) from the torch module."""
    return _ssim_pallas_jit(img1, img2, window_size, size_average, return_map)


def ssim_reference(img1, img2, window_size=WINDOW_SIZE):
    """Pure-JAX reference mirroring torch F.conv2d(groups=C) semantics."""
    B, C, H, W = img1.shape
    pad = window_size // 2
    window = jnp.broadcast_to(jnp.asarray(_W2D)[None, None],
                              (C, 1, window_size, window_size))

    def conv(x):
        return jax.lax.conv_general_dilated(
            x, window, window_strides=(1, 1),
            padding=[(pad, pad), (pad, pad)],
            dimension_numbers=("NCHW", "OIHW", "NCHW"),
            feature_group_count=C,
            precision=jax.lax.Precision.HIGHEST)

    mu1 = conv(img1)
    mu2 = conv(img2)
    mu1_sq = mu1 ** 2
    mu2_sq = mu2 ** 2
    mu1_mu2 = mu1 * mu2
    sigma1_sq = conv(img1 * img1) - mu1_sq
    sigma2_sq = conv(img2 * img2) - mu2_sq
    sigma12 = conv(img1 * img2) - mu1_mu2
    ssim_map = ((2 * mu1_mu2 + C1) * (2 * sigma12 + C2)
                / ((mu1_sq + mu2_sq + C1) * (sigma1_sq + sigma2_sq + C2)))
    return jnp.mean(ssim_map), ssim_map


if __name__ == "__main__":
    key = jax.random.PRNGKey(0)
    k1, k2 = jax.random.split(key)
    B, C, H, W = 2, 4, 16, 16
    img1 = jax.random.uniform(k1, (B, C, H, W), dtype=jnp.float32)
    img2 = jax.random.uniform(k2, (B, C, H, W), dtype=jnp.float32)

    mean_pallas, map_pallas = ssim_pallas(img1, img2, return_map=True)
    mean_pallas = jax.block_until_ready(mean_pallas)
    map_pallas = jax.block_until_ready(map_pallas)

    mean_ref, map_ref = ssim_reference(img1, img2)
    np.testing.assert_allclose(np.asarray(map_pallas), np.asarray(map_ref),
                               rtol=1e-4, atol=1e-5)
    np.testing.assert_allclose(float(mean_pallas), float(mean_ref),
                               rtol=1e-4, atol=1e-5)

    print("KERNEL_OK")
</pallas_src>

<mosaic_0001>
module attributes {stable_mosaic.version = 11 : i64} {
  func.func @ssim_kernel(%arg0: i32, %arg1: memref<16x16xf32, #tpu.memory_space<vmem>>, %arg2: memref<128x128xf32, #tpu.memory_space<vmem>>, %arg3: memref<16x128xf32, #tpu.memory_space<vmem>>, %arg4: memref<16x128xf32, #tpu.memory_space<vmem>>, %arg5: memref<16x128xf32, #tpu.memory_space<vmem>>) attributes {dimension_semantics = [#tpu.dimension_semantics<parallel>], iteration_bounds = array<i64: 1>, scalar_prefetch = 0 : i64, scratch_operands = 0 : i64, tpu.core_type = #tpu.core_type<tc>, window_params = [{pipeline_mode = #tpu.pipeline_mode<synchronous>, transform_indices = @transform_0, window_bounds = array<i64: 16, 16>}, {pipeline_mode = #tpu.pipeline_mode<synchronous>, transform_indices = @transform_1, window_bounds = array<i64: 128, 128>}, {transform_indices = @transform_2, window_bounds = array<i64: 16, 128>}, {transform_indices = @transform_3, window_bounds = array<i64: 16, 128>}, {transform_indices = @transform_4, window_bounds = array<i64: 16, 128>}]} {
    %c0 = arith.constant 0 : index
    %c0_0 = arith.constant 0 : index
    %0 = vector.load %arg3[%c0, %c0_0] : memref<16x128xf32, #tpu.memory_space<vmem>>, vector<16x128xf32>
    %c0_1 = arith.constant 0 : index
    %c0_2 = arith.constant 0 : index
    %1 = vector.load %arg4[%c0_1, %c0_2] : memref<16x128xf32, #tpu.memory_space<vmem>>, vector<16x128xf32>
    %c0_3 = arith.constant 0 : index
    %c0_4 = arith.constant 0 : index
    %2 = vector.load %arg1[%c0_3, %c0_4] : memref<16x16xf32, #tpu.memory_space<vmem>>, vector<16x16xf32>
    %c0_5 = arith.constant 0 : index
    %c0_6 = arith.constant 0 : index
    %3 = vector.load %arg2[%c0_5, %c0_6] : memref<128x128xf32, #tpu.memory_space<vmem>>, vector<128x128xf32>
    %cst = arith.constant dense<0.000000e+00> : vector<16x128xf32>
    %4 = tpu.matmul %2, %0, %cst {dimension_numbers = #tpu.dot_dimension_numbers<[1], [0], [0], [1], [0, 0, 1, 1], [], []>, precision = #tpu.contract_precision<fp32>} : vector<16x16xf32>, vector<16x128xf32>, vector<16x128xf32> -> vector<16x128xf32>
    %cst_7 = arith.constant dense<0.000000e+00> : vector<16x128xf32>
    %5 = tpu.matmul %4, %3, %cst_7 {dimension_numbers = #tpu.dot_dimension_numbers<[1], [0], [0], [1], [0, 0, 1, 1], [], []>, precision = #tpu.contract_precision<fp32>} : vector<16x128xf32>, vector<128x128xf32>, vector<16x128xf32> -> vector<16x128xf32>
    %cst_8 = arith.constant dense<0.000000e+00> : vector<16x128xf32>
    %6 = tpu.matmul %2, %1, %cst_8 {dimension_numbers = #tpu.dot_dimension_numbers<[1], [0], [0], [1], [0, 0, 1, 1], [], []>, precision = #tpu.contract_precision<fp32>} : vector<16x16xf32>, vector<16x128xf32>, vector<16x128xf32> -> vector<16x128xf32>
    %cst_9 = arith.constant dense<0.000000e+00> : vector<16x128xf32>
    %7 = tpu.matmul %6, %3, %cst_9 {dimension_numbers = #tpu.dot_dimension_numbers<[1], [0], [0], [1], [0, 0, 1, 1], [], []>, precision = #tpu.contract_precision<fp32>} : vector<16x128xf32>, vector<128x128xf32>, vector<16x128xf32> -> vector<16x128xf32>
    %8 = arith.mulf %0, %0 : vector<16x128xf32>
    %cst_10 = arith.constant dense<0.000000e+00> : vector<16x128xf32>
    %9 = tpu.matmul %2, %8, %cst_10 {dimension_numbers = #tpu.dot_dimension_numbers<[1], [0], [0], [1], [0, 0, 1, 1], [], []>, precision = #tpu.contract_precision<fp32>} : vector<16x16xf32>, vector<16x128xf32>, vector<16x128xf32> -> vector<16x128xf32>
    %cst_11 = arith.constant dense<0.000000e+00> : vector<16x128xf32>
    %10 = tpu.matmul %9, %3, %cst_11 {dimension_numbers = #tpu.dot_dimension_numbers<[1], [0], [0], [1], [0, 0, 1, 1], [], []>, precision = #tpu.contract_precision<fp32>} : vector<16x128xf32>, vector<128x128xf32>, vector<16x128xf32> -> vector<16x128xf32>
    %11 = arith.mulf %1, %1 : vector<16x128xf32>
    %cst_12 = arith.constant dense<0.000000e+00> : vector<16x128xf32>
    %12 = tpu.matmul %2, %11, %cst_12 {dimension_numbers = #tpu.dot_dimension_numbers<[1], [0], [0], [1], [0, 0, 1, 1], [], []>, precision = #tpu.contract_precision<fp32>} : vector<16x16xf32>, vector<16x128xf32>, vector<16x128xf32> -> vector<16x128xf32>
    %cst_13 = arith.constant dense<0.000000e+00> : vector<16x128xf32>
    %13 = tpu.matmul %12, %3, %cst_13 {dimension_numbers = #tpu.dot_dimension_numbers<[1], [0], [0], [1], [0, 0, 1, 1], [], []>, precision = #tpu.contract_precision<fp32>} : vector<16x128xf32>, vector<128x128xf32>, vector<16x128xf32> -> vector<16x128xf32>
    %14 = arith.mulf %0, %1 : vector<16x128xf32>
    %cst_14 = arith.constant dense<0.000000e+00> : vector<16x128xf32>
    %15 = tpu.matmul %2, %14, %cst_14 {dimension_numbers = #tpu.dot_dimension_numbers<[1], [0], [0], [1], [0, 0, 1, 1], [], []>, precision = #tpu.contract_precision<fp32>} : vector<16x16xf32>, vector<16x128xf32>, vector<16x128xf32> -> vector<16x128xf32>
    %cst_15 = arith.constant dense<0.000000e+00> : vector<16x128xf32>
    %16 = tpu.matmul %15, %3, %cst_15 {dimension_numbers = #tpu.dot_dimension_numbers<[1], [0], [0], [1], [0, 0, 1, 1], [], []>, precision = #tpu.contract_precision<fp32>} : vector<16x128xf32>, vector<128x128xf32>, vector<16x128xf32> -> vector<16x128xf32>
    %17 = arith.mulf %5, %5 : vector<16x128xf32>
    %18 = arith.mulf %7, %7 : vector<16x128xf32>
    %19 = arith.mulf %5, %7 : vector<16x128xf32>
    %20 = arith.subf %10, %17 : vector<16x128xf32>
    %21 = arith.subf %13, %18 : vector<16x128xf32>
    %22 = arith.subf %16, %19 : vector<16x128xf32>
    %cst_16 = arith.constant 2.000000e+00 : f32
    %23 = vector.broadcast %cst_16 : f32 to vector<16x128xf32>
    %24 = arith.mulf %23, %19 : vector<16x128xf32>
    %cst_17 = arith.constant 9.99999974E-5 : f32
    %25 = vector.broadcast %cst_17 : f32 to vector<16x128xf32>
    %26 = arith.addf %24, %25 : vector<16x128xf32>
    %cst_18 = arith.constant 2.000000e+00 : f32
    %27 = vector.broadcast %cst_18 : f32 to vector<16x128xf32>
    %28 = arith.mulf %27, %22 : vector<16x128xf32>
    %cst_19 = arith.constant 8.99999984E-4 : f32
    %29 = vector.broadcast %cst_19 : f32 to vector<16x128xf32>
    %30 = arith.addf %28, %29 : vector<16x128xf32>
    %31 = arith.mulf %26, %30 : vector<16x128xf32>
    %32 = arith.addf %17, %18 : vector<16x128xf32>
    %cst_20 = arith.constant 9.99999974E-5 : f32
    %33 = vector.broadcast %cst_20 : f32 to vector<16x128xf32>
    %34 = arith.addf %32, %33 : vector<16x128xf32>
    %35 = arith.addf %20, %21 : vector<16x128xf32>
    %cst_21 = arith.constant 8.99999984E-4 : f32
    %36 = vector.broadcast %cst_21 : f32 to vector<16x128xf32>
    %37 = arith.addf %35, %36 : vector<16x128xf32>
    %38 = arith.mulf %34, %37 : vector<16x128xf32>
    %39 = arith.divf %31, %38 : vector<16x128xf32>
    %c0_22 = arith.constant 0 : index
    %c0_23 = arith.constant 0 : index
    %40 = vector.load %arg5[%c0_22, %c0_23] : memref<16x128xf32, #tpu.memory_space<vmem>>, vector<16x128xf32>
    tpu.vector_store %arg5[%c0_22, %c0_23], %39 {strides = array<i32>} : memref<16x128xf32, #tpu.memory_space<vmem>>, vector<16x128xf32>,
    return
  }
  func.func @transform_0(%arg0: i32) -> (i32, i32) {
    %c0_i32 = arith.constant 0 : i32
    %c0_i32_0 = arith.constant 0 : i32
    %c0_i32_1 = arith.constant 0 : i32
    return %c0_i32, %c0_i32_0 : i32, i32
  }
  func.func @transform_1(%arg0: i32) -> (i32, i32) {
    %c0_i32 = arith.constant 0 : i32
    %c0_i32_0 = arith.constant 0 : i32
    %c0_i32_1 = arith.constant 0 : i32
    return %c0_i32, %c0_i32_0 : i32, i32
  }
  func.func @transform_2(%arg0: i32) -> (i32, i32) {
    %c0_i32 = arith.constant 0 : i32
    %c0_i32_0 = arith.constant 0 : i32
    return %c0_i32, %arg0 : i32, i32
  }
  func.func @transform_3(%arg0: i32) -> (i32, i32) {
    %c0_i32 = arith.constant 0 : i32
    %c0_i32_0 = arith.constant 0 : i32
    return %c0_i32, %arg0 : i32, i32
  }
  func.func @transform_4(%arg0: i32) -> (i32, i32) {
    %c0_i32 = arith.constant 0 : i32
    %c0_i32_0 = arith.constant 0 : i32
    return %c0_i32, %arg0 : i32, i32
  }
}

</mosaic_0001>

<bundles_post_ra>
// kernel: _ssim_pallas_jit.1
= control target key start
LH: loop header
LB: loop body
LE: loop exit
PB: predicated region body
PF: predicated region fallthrough
CT: control target
= control target key end

     0   :  { %vm39_vm0 = vcmask 130048   ;;  %s10241_s2 = inlined_call_operand.vmem [shape: f32[16,128], index: 2, kind: input, shape index: {}]   ;;  %s10242_s0 = inlined_call_operand.vmem [shape: f32[16,16], index: 0, kind: input, shape index: {}]   ;;  %s10243_s1 = inlined_call_operand.vmem [shape: f32[128,128], index: 1, kind: input, shape index: {}]   ;;  %s10244_s3 = inlined_call_operand.vmem [shape: f32[16,128], index: 3, kind: input, shape index: {}]   ;;  %s10245_s4 = inlined_call_operand.vmem [shape: f32[16,128], index: 4, kind: output, shape index: {}]  }
   0x1   :  { %v9158_v0 = vld [vmem:[%s10241_s2] sm:$0xff]  ;;  %v9163_v1 = vld [vmem:[%s10241_s2 + $0x8] sm:$0xff]  ;;  %v9228_v35 = vld [vmem:[%s10243_s1 + $0x10] sm:$0xff] }
   0x2   :  { %v21_v2 = vld [vmem:[%s10242_s0] sm:$0xff]  ;;  %v47_v3 = vand.u32 4294901760, %v9158_v0  ;;  %v50_v4 = vand.u32 4294901760, %v9163_v1  ;;  %v22_v6 = vld [vmem:[%s10242_s0 + $0x8] sm:$0xff]  ;;  %v9233_v36 = vld [vmem:[%s10243_s1 + $0x18] sm:$0xff]  ;;  %v555_v37 = vand.u32 4294901760, %v9228_v35 }
   0x3   :  { %v41_v5 = vsel %vm39_vm0, %v21_v2, 0  ;;  %v44_v8 = vsel %vm39_vm0, %v22_v6, 0  ;;  %v9203_v27 = vld [vmem:[%s10243_s1] sm:$0xff]  ;;  %v9208_v28 = vld [vmem:[%s10243_s1 + $0x8] sm:$0xff]  ;;  %v558_v38 = vand.u32 4294901760, %v9233_v36  ;;  %v9264_v44 = vld [vmem:[%s10243_s1 + $0x30] sm:$0xff] }
   0x4   :  { %v9173_v7 = vand.u32 4294901760, %v41_v5  ;;  %v7944_v9 = vpack.c.bf16 %v50_v4, %v47_v3  ;;  %v9175_v10 = vand.u32 4294901760, %v44_v8  ;;  %v135_v11 = vsub.f32 %v9158_v0, %v47_v3  ;;  %v9243_v39 = vld [vmem:[%s10243_s1 + $0x20] sm:$0xff]  ;;  %v9248_v40 = vld [vmem:[%s10243_s1 + $0x28] sm:$0xff]  ;;  %v9269_v45 = vld [vmem:[%s10243_s1 + $0x38] sm:$0xff] }
   0x5   :  { %v142_v12 = vsub.f32 %v9163_v1, %v50_v4  ;;  %v549_v32 = vand.u32 4294901760, %v9203_v27  ;;  %v552_v33 = vand.u32 4294901760, %v9208_v28  ;;  %v9256_v41 = vpack.c.bf16 %v558_v38, %v555_v37  ;;  %v9286_v49 = vld [vmem:[%s10243_s1 + $0x40] sm:$0xff]  ;;  %v9291_v50 = vld [vmem:[%s10243_s1 + $0x48] sm:$0xff]  ;;  %v33_v55 = vld [vmem:[%s10243_s1 + $0x50] sm:$0xff] }
   0x6   :  { %v9180_v13 = vsub.f32 %v41_v5, %v9173_v7  ;;  %7957 = vmatprep.subr.bf16.mxu0 %v7944_v9  ;;  %7945 = vmatprep.subr.bf16.mxu1 %v7944_v9  ;;  %v9183_v14 = vsub.f32 %v44_v8, %v9175_v10  ;;  %v136_v15 = vand.u32 4294901760, %v135_v11  ;;  %v561_v42 = vand.u32 4294901760, %v9243_v39  ;;  %v34_v56 = vld [vmem:[%s10243_s1 + $0x58] sm:$0xff]  ;;  %v35_v60 = vld [vmem:[%s10243_s1 + $0x60] sm:$0xff]  ;;  %v36_v61 = vld [vmem:[%s10243_s1 + $0x68] sm:$0xff] }
   0x7   :  { %v143_v16 = vand.u32 4294901760, %v142_v12  ;;  %7959 = vmatpush3.bf16.msra.mxu0 %v7944_v9  ;;  %7947 = vmatpush3.bf16.msra.mxu1 %v7944_v9  ;;  %v7952_v31 = vpack.c.bf16 %v142_v12, %v135_v11  ;;  %v9222_v34 = vpack.c.bf16 %v552_v33, %v549_v32  ;;  %v10250_v43 = vand.u32 4294901760, %v9248_v40  ;;  %v37_v3 = vld [vmem:[%s10243_s1 + $0x70] sm:$0xff]  ;;  %v38_v4 = vld [vmem:[%s10243_s1 + $0x78] sm:$0xff] }
   0x8   :  { %v9186_v17 = vand.u32 4294901760, %v9180_v13  ;;  %v9189_v18 = vand.u32 4294901760, %v9183_v14  ;;  %v137_v19 = vsub.f32 %v135_v11, %v136_v15  ;;  %v10249_v47 = vand.u32 4294901760, %v9264_v44 }
   0x9   :  { %v144_v20 = vsub.f32 %v142_v12, %v143_v16  ;;  %v7960_v21 = vpack.c.bf16 %v143_v16, %v136_v15  ;;  %v9277_v46 = vpack.c.bf16 %v10250_v43, %v561_v42  ;;  %v10248_v48 = vand.u32 4294901760, %v9269_v45 }
   0xa   :  { %6709 = vmatprep.mubr.f32.mxu0 %v9186_v17  ;;  %v116_v22 = vsub.f32 %v9180_v13, %v9186_v17  ;;  %v126_v23 = vsub.f32 %v9183_v14, %v9189_v18  ;;  %v138_v24 = vand.u32 4294901760, %v137_v19  ;;  %v10247_v52 = vand.u32 4294901760, %v9286_v49 }
   0xb   :  { %6710 = vmatmul.mubr.f32.vlgmr.msra.gmra.mrb[0].mxu0 %v9189_v18  ;;  %v145_v25 = vand.u32 4294901760, %v144_v20  ;;  %7961 = vmatprep.subr.bf16.mxu0 %v7960_v21  ;;  %v9299_v51 = vpack.c.bf16 %v10248_v48, %v10249_v47  ;;  %v10246_v53 = vand.u32 4294901760, %v9291_v50  ;;  %v579_v57 = vand.u32 4294901760, %v33_v55 }
   0xc   :  { %v9197_v26 = vand.u32 4294901760, %v116_v22  ;;  %7963 = vmatpush3.bf16.msra.mxu0 %v7960_v21  ;;  %6716 = vmatprep.mubr.f32.mxu0 %v9173_v7  ;;  %v9210_v29 = vand.u32 4294901760, %v126_v23  ;;  %v582_v58 = vand.u32 4294901760, %v34_v56  ;;  %v585_v62 = vand.u32 4294901760, %v35_v60 }
   0xd   :  { %v7948_v30 = vpack.c.bf16 %v145_v25, %v138_v24  ;;  %7965 = vmatprep.subr.bf16.mxu0 %v7944_v9  ;;  %v9311_v54 = vpack.c.bf16 %v10246_v53, %v10247_v52  ;;  %v588_v63 = vand.u32 4294901760, %v36_v61  ;;  %v591_v5 = vand.u32 4294901760, %v37_v3 }
   0xe   :  { %6688 = vmatprep.mubr.f32.mxu1 %v9197_v26  ;;  %v9327_v59 = vpack.c.bf16 %v582_v58, %v579_v57  ;;  %v594_v6 = vand.u32 4294901760, %v38_v4  ;;  %v658_v11 = vsub.f32 %v9208_v28, %v552_v33  ;;  %v721_v24 = vsub.f32 %v33_v55, %v579_v57 }
   0xf   :  { %6689 = vmatmul.mubr.f32.vlgmr.msra.gmra.mrb[0].mxu1 %v9210_v29  ;;  %7949 = vmatprep.subr.bf16.mxu1 %v7948_v30  ;;  %v9339_v2 = vpack.c.bf16 %v588_v63, %v585_v62  ;;  %v728_v25 = vsub.f32 %v34_v56, %v582_v58  ;;  %v735_v33 = vsub.f32 %v35_v60, %v585_v62 }
  0x10   :  { %7951 = vmatpush3.bf16.msra.mxu1 %v7948_v30  ;;  %6695 = vmatprep.mubr.f32.mxu1 %v9173_v7  ;;  %v9351_v8 = vpack.c.bf16 %v594_v6, %v591_v5  ;;  %v659_v15 = vand.u32 4294901760, %v658_v11  ;;  %v742_v53 = vsub.f32 %v36_v61, %v588_v63 }
  0x11   :  { %7953 = vmatprep.subr.bf16.mxu1 %v7952_v31  ;;  %v729_v28 = vand.u32 4294901760, %v728_v25  ;;  %v736_v52 = vand.u32 4294901760, %v735_v33 }
  0x12   :  { %v660_v20 = vsub.f32 %v658_v11, %v659_v15  ;;  %v743_v48 = vand.u32 4294901760, %v742_v53 }
  0x13   :  { %6717 = vmatmul.mubr.f32.vlgmr.msra.gmra.mrb[0].mxu0 %v9175_v10 }
  0x14   :  { %7967 = vmatpush3.bf16.msra.mxu0 %v7944_v9  ;;  %6723 = vmatprep.mubr.f32.mxu0 %v9173_v7  ;;  %v651_v9 = vsub.f32 %v9203_v27, %v549_v32  ;;  %v661_v22 = vand.u32 4294901760, %v660_v20  ;;  %v722_v27 = vand.u32 4294901760, %v721_v24  ;;  %v730_v32 = vsub.f32 %v728_v25, %v729_v28 }
  0x15   :  { %7969 = vmatprep.subr.bf16.mxu0 %v9222_v34  ;;  %v737_v20 = vsub.f32 %v735_v33, %v736_v52  ;;  %v9373_v47 = vpack.c.bf16 %v743_v48, %v736_v52  ;;  %v744_v55 = vsub.f32 %v742_v53, %v743_v48  ;;  %v9385_v52 = vpack.c.bf16 %v742_v53, %v735_v33 }
  0x16   :  { %v652_v12 = vand.u32 4294901760, %v651_v9  ;;  %v9369_v30 = vpack.c.bf16 %v729_v28, %v722_v27 }
  0x17   :  { %6696 = vmatmul.mubr.f32.vlgmr.msra.gmra.mrb[0].mxu1 %v9175_v10  ;;  %10263 = vst [vmem:[#allocation3_spill] sm:$0xff] %v9373_v47  ;;  %v738_v56 = vand.u32 4294901760, %v737_v20  ;;  %v745_v43 = vand.u32 4294901760, %v744_v55  ;;  %v10267_v55 = vand.u32 4294901760, %v9269_v45 }
  0x18   :  { %7955 = vmatpush3.bf16.msra.mxu1 %v7952_v31  ;;  %6702 = vmatprep.mubr.f32.mxu1 %v9180_v13  ;;  %v9363_v16 = vpack.c.bf16 %v659_v15, %v652_v12  ;;  %v653_v19 = vsub.f32 %v651_v9, %v652_v12  ;;  %10262 = vst [vmem:[#allocation2_spill] sm:$0xff] %v9369_v30  ;;  %v731_v15 = vand.u32 4294901760, %v730_v32 }
  0x19   :  { %8065 = vmatprep.subr.bf16.mxu1 %v9222_v34  ;;  %v723_v31 = vsub.f32 %v721_v24, %v722_v27  ;;  %v9377_v62 = vpack.c.bf16 %v745_v43, %v738_v56  ;;  %v9381_v32 = vpack.c.bf16 %v658_v11, %v651_v9  ;;  %v9397_v43 = vsub.f32 %v9233_v36, %v558_v38 }
  0x1a   :  { %v654_v21 = vand.u32 4294901760, %v653_v19  ;;  %v9430_v56 = vsub.f32 %v9269_v45, %v10267_v55 }
  0x1b   :  { %6724 = vmatmul.mubr.f32.vlgmr.msra.gmra.mrb[0].mxu0 %v9175_v10  ;;  %v724_v12 = vand.u32 4294901760, %v723_v31  ;;  %v673_v11 = vand.u32 4294901760, %v9397_v43 }
  0x1c   :  { %7971 = vmatpush3.bf16.msra.mxu0 %v9222_v34  ;;  %v9366_v23 = vpack.c.bf16 %v661_v22, %v654_v21  ;;  %v749_v21 = vsub.f32 %v37_v3, %v591_v5  ;;  %v756_v22 = vsub.f32 %v38_v4, %v594_v6  ;;  %v9383_v3 = vpack.c.bf16 %v728_v25, %v721_v24 }
  0x1d   :  { %7973 = vmatprep.subr.bf16.mxu0 %v9256_v41  ;;  %v9371_v19 = vpack.c.bf16 %v731_v15, %v724_v12  ;;  %v9392_v4 = vsub.f32 %v9228_v35, %v555_v37  ;;  %v9404_v24 = vsub.f32 %v9243_v39, %v561_v42  ;;  %v10265_v35 = vand.u32 4294901760, %v9248_v40 }
  0x1e   :  { %v750_v57 = vand.u32 4294901760, %v749_v21  ;;  %v757_v58 = vand.u32 4294901760, %v756_v22  ;;  %v9387_v48 = vpack.c.bf16 %v756_v22, %v749_v21  ;;  %v674_v15 = vsub.f32 %v9397_v43, %v673_v11 }
  0x1f   :  { %6703 = vmatmul.mubr.f32.vlgmr.msra.gmra.mrb[0].mxu1 %v9183_v14  ;;  %v666_v9 = vand.u32 4294901760, %v9392_v4  ;;  %v9409_v37 = vsub.f32 %v9248_v40, %v10265_v35  ;;  %v10266_v42 = vand.u32 4294901760, %v9264_v44  ;;  %v10268_v35 = vand.u32 4294901760, %v9286_v49 }
  0x20   :  { %8067 = vmatpush3.bf16.msra.mxu1 %v9222_v34  ;;  %7975 = vmatpush3.bf16.msra.mxu0 %v9256_v41  ;;  %v9375_v27 = vpack.c.bf16 %v757_v58, %v750_v57  ;;  %v751_v60 = vsub.f32 %v749_v21, %v750_v57  ;;  %v758_v61 = vsub.f32 %v756_v22, %v757_v58  ;;  %v680_v21 = vand.u32 4294901760, %v9404_v24 }
  0x21   :  { %8069 = vmatprep.subr.bf16.mxu1 %v9256_v41  ;;  %7977 = vmatprep.subr.bf16.mxu0 %v9277_v46  ;;  %v667_v12 = vsub.f32 %v9392_v4, %v666_v9  ;;  %v687_v39 = vand.u32 4294901760, %v9409_v37  ;;  %v9422_v40 = vsub.f32 %v9264_v44, %v10266_v42 }
  0x22   :  { %10264 = vst [vmem:[#allocation4_spill] sm:$0xff] %v9375_v27  ;;  %v752_v63 = vand.u32 4294901760, %v751_v60  ;;  %v759_v28 = vand.u32 4294901760, %v758_v61  ;;  %v9436_v60 = vpack.c.bf16 %v673_v11, %v666_v9  ;;  %v10269_v9 = vand.u32 4294901760, %v9291_v50 }
  0x23   :  { %v668_v61 = vand.u32 4294901760, %v667_v12 }
  0x24   :  { %8071 = vmatpush3.bf16.msra.mxu1 %v9256_v41  ;;  %7979 = vmatpush3.bf16.msra.mxu0 %v9277_v46  ;;  %v9379_v31 = vpack.c.bf16 %v759_v28, %v752_v63  ;;  %v675_v63 = vand.u32 4294901760, %v674_v15  ;;  %v681_v28 = vsub.f32 %v9404_v24, %v680_v21  ;;  %v9452_v11 = vsub.f32 %v9291_v50, %v10269_v9 }
  0x25   :  { %8073 = vmatprep.subr.bf16.mxu1 %v9277_v46  ;;  %7981 = vmatprep.subr.bf16.mxu0 %v9299_v51 }
  0x26   :  { %v682_v15 = vand.u32 4294901760, %v681_v28 }
  0x28   :  { %8075 = vmatpush3.bf16.msra.mxu1 %v9277_v46  ;;  %7983 = vmatpush3.bf16.msra.mxu0 %v9299_v51 }
  0x29   :  { %8077 = vmatprep.subr.bf16.mxu1 %v9299_v51  ;;  %7985 = vmatprep.subr.bf16.mxu0 %v9311_v54 }
  0x2c   :  { %8079 = vmatpush3.bf16.msra.mxu1 %v9299_v51  ;;  %7987 = vmatpush3.bf16.msra.mxu0 %v9311_v54 }
  0x2d   :  { %8081 = vmatprep.subr.bf16.mxu1 %v9311_v54  ;;  %7989 = vmatprep.subr.bf16.mxu0 %v9327_v59 }
  0x30   :  { %8083 = vmatpush3.bf16.msra.mxu1 %v9311_v54  ;;  %7991 = vmatpush3.bf16.msra.mxu0 %v9327_v59 }
  0x31   :  { %8085 = vmatprep.subr.bf16.mxu1 %v9327_v59  ;;  %7993 = vmatprep.subr.bf16.mxu0 %v9339_v2 }
  0x34   :  { %8087 = vmatpush3.bf16.msra.mxu1 %v9327_v59  ;;  %7995 = vmatpush3.bf16.msra.mxu0 %v9339_v2 }
  0x35   :  { %8089 = vmatprep.subr.bf16.mxu1 %v9339_v2  ;;  %7997 = vmatprep.subr.bf16.mxu0 %v9351_v8 }
  0x38   :  { %8091 = vmatpush3.bf16.msra.mxu1 %v9339_v2  ;;  %7999 = vmatpush3.bf16.msra.mxu0 %v9351_v8 }
  0x39   :  { %8093 = vmatprep.subr.bf16.mxu1 %v9351_v8  ;;  %8001 = vmatprep.subr.bf16.mxu0 %v9366_v23 }
  0x3c   :  { %8095 = vmatpush3.bf16.msra.mxu1 %v9351_v8 }
  0x3d   :  { %8097 = vmatprep.subr.bf16.mxu1 %v9363_v16 }
  0xee   :  { %v6725_v5 = vpop.f32.mrb[0].mxu0 }
  0xef   :  { %v538_v6 = vpop.f32.mrb[1].mxu0 }
  0xf2   :  { %v6704_v53 = vpop.f32.mrb[0].mxu1 }
  0xf3   :  { %v9024_v25 = vadd.f32 %v6725_v5, %v6704_v53  ;;  %v292_v36 = vpop.f32.mrb[1].mxu1  ;;  %v688_v5 = vsub.f32 %v9409_v37, %v687_v39  ;;  %v701_v53 = vand.u32 4294901760, %v9430_v56 }
  0xf4   :  { %v9025_v38 = vadd.f32 %v538_v6, %v292_v36  ;;  %v694_v6 = vand.u32 4294901760, %v9422_v40 }
  0xf5   :  { %v9411_v33 = vand.u32 4294901760, %v9024_v25  ;;  %v689_v42 = vand.u32 4294901760, %v688_v5  ;;  %v702_v50 = vsub.f32 %v9430_v56, %v701_v53 }
  0xf6   :  { %v9415_v20 = vand.u32 4294901760, %v9025_v38 }
  0xf7   :  { %v9425_v22 = vsub.f32 %v9024_v25, %v9411_v33  ;;  %v9447_v25 = vsub.f32 %v9286_v49, %v10268_v35  ;;  %v695_v49 = vsub.f32 %v9422_v40, %v694_v6  ;;  %v703_v5 = vand.u32 4294901760, %v702_v50 }
  0xf8   :  { %v9433_v57 = vsub.f32 %v9025_v38, %v9415_v20  ;;  %v9455_v38 = vpack.c.bf16 %v675_v63, %v668_v61  ;;  %v9464_v61 = vpack.c.bf16 %v687_v39, %v680_v21  ;;  %v9468_v63 = vpack.c.bf16 %v689_v42, %v682_v15 }
  0xf9   :  { %v641_v58 = vand.u32 4294901760, %v9425_v22  ;;  %v708_v35 = vand.u32 4294901760, %v9447_v25  ;;  %v696_v28 = vand.u32 4294901760, %v695_v49 }
  0xfa   :  { %v631_v44 = vand.u32 4294901760, %v9433_v57 }
  0xfb   :  { %v642_v45 = vsub.f32 %v9425_v22, %v641_v58  ;;  %v9481_v39 = vpack.c.bf16 %v703_v5, %v696_v28 }
  0xfc   :  { %6863 = vmatprep.mubr.f32.mxu1 %v631_v44  ;;  %v632_v36 = vsub.f32 %v9433_v57, %v631_v44  ;;  %v9470_v44 = vpack.c.bf16 %v701_v53, %v694_v6 }
  0xfd   :  { %6864 = vmatmul.mubr.f32.vlgmr.msra.gmra.mrb[2].mxu1 %v641_v58  ;;  %v643_v55 = vand.u32 4294901760, %v642_v45  ;;  %v715_v58 = vand.u32 4294901760, %v9452_v11  ;;  %v709_v45 = vsub.f32 %v9447_v25, %v708_v35 }
  0xfe   :  { %8099 = vmatpush3.bf16.msra.mxu1 %v9363_v16  ;;  %6898 = vmatprep.mubr.f32.mxu1 %v9415_v20  ;;  %v633_v12 = vand.u32 4294901760, %v632_v36 }
  0xff   :  { %8101 = vmatprep.subr.bf16.mxu1 %v9436_v60  ;;  %v716_v21 = vsub.f32 %v9452_v11, %v715_v58  ;;  %v9483_v6 = vpack.c.bf16 %v715_v58, %v708_v35  ;;  %v710_v53 = vand.u32 4294901760, %v709_v45 }
 0x100   :  { %6758 = vmatprep.mubr.f32.mxu0 %v633_v12  ;;  %v9514_v12 = vpack.c.bf16 %v9397_v43, %v9392_v4  ;;  %v2418_v4 = vmul.f32 %v9158_v0, %v9158_v0  ;;  %v2419_v43 = vmul.f32 %v9163_v1, %v9163_v1  ;;  %v9542_v0 = vld [vmem:[%s10244_s3] sm:$0xff]  ;;  %v9547_v1 = vld [vmem:[%s10244_s3 + $0x8] sm:$0xff] }
 0x101   :  { %6759 = vmatmul.mubr.f32.vlgmr.msra.gmra.mrb[2].mxu0 %v643_v55  ;;  %v717_v9 = vand.u32 4294901760, %v716_v21  ;;  %10270 = vst [vmem:[#allocation5_spill] sm:$0xff] %v9542_v0  ;;  %10271 = vst [vmem:[#allocation6_spill] sm:$0xff] %v9547_v1  ;;  %v1236_v15 = vand.u32 4294901760, %v9547_v1 }
 0x102   :  { %8003 = vmatpush3.bf16.msra.mxu0 %v9366_v23  ;;  %8103 = vmatpush3.bf16.msra.mxu1 %v9436_v60 }
 0x103   :  { %6793 = vmatprep.mubr.f32.mxu0 %v9415_v20  ;;  %8005 = vmatprep.subr.bf16.mxu0 %v9455_v38  ;;  %v9489_v36 = vpack.c.bf16 %v717_v9, %v710_v53 }
 0x104   :  { %8105 = vmatprep.subr.bf16.mxu1 %v9464_v61 }
 0x106   :  { %8007 = vmatpush3.bf16.msra.mxu0 %v9455_v38  ;;  %8107 = vmatpush3.bf16.msra.mxu1 %v9464_v61 }
 0x107   :  { %8009 = vmatprep.subr.bf16.mxu0 %v9468_v63  ;;  %8109 = vmatprep.subr.bf16.mxu1 %v9470_v44 }
 0x10a   :  { %8011 = vmatpush3.bf16.msra.mxu0 %v9468_v63  ;;  %8111 = vmatpush3.bf16.msra.mxu1 %v9470_v44 }
 0x10b   :  { %8013 = vmatprep.subr.bf16.mxu0 %v9481_v39  ;;  %8113 = vmatprep.subr.bf16.mxu1 %v9483_v6 }
 0x10e   :  { %8015 = vmatpush3.bf16.msra.mxu0 %v9481_v39  ;;  %8115 = vmatpush3.bf16.msra.mxu1 %v9483_v6 }
 0x10f   :  { %8017 = vmatprep.subr.bf16.mxu0 %v9489_v36  ;;  %8117 = vmatprep.subr.bf16.mxu1 %v9369_v30 }
 0x112   :  { %8019 = vmatpush3.bf16.msra.mxu0 %v9489_v36  ;;  %8119 = vmatpush3.bf16.msra.mxu1 %v9369_v30 }
 0x113   :  { %8021 = vmatprep.subr.bf16.mxu0 %v9371_v19  ;;  %8121 = vmatprep.subr.bf16.mxu1 %v9373_v47 }
 0x116   :  { %8023 = vmatpush3.bf16.msra.mxu0 %v9371_v19  ;;  %8123 = vmatpush3.bf16.msra.mxu1 %v9373_v47 }
 0x117   :  { %8025 = vmatprep.subr.bf16.mxu0 %v9377_v62  ;;  %8125 = vmatprep.subr.bf16.mxu1 %v9375_v27 }
 0x11a   :  { %8027 = vmatpush3.bf16.msra.mxu0 %v9377_v62  ;;  %8127 = vmatpush3.bf16.msra.mxu1 %v9375_v27 }
 0x11b   :  { %8029 = vmatprep.subr.bf16.mxu0 %v9379_v31  ;;  %8129 = vmatprep.subr.bf16.mxu1 %v9222_v34 }
 0x11d   :  { %6899 = vmatmul.mubr.f32.vlgmr.msra.gmra.mrb[2].mxu1 %v9411_v33 }
 0x11e   :  { %8031 = vmatpush3.bf16.msra.mxu0 %v9379_v31  ;;  %8131 = vmatpush3.bf16.msra.mxu1 %v9222_v34 }
 0x11f   :  { %6933 = vmatprep.mubr.f32.mxu1 %v9415_v20  ;;  %8033 = vmatprep.subr.bf16.mxu0 %v9381_v32  ;;  %v9524_v20 = vpack.c.bf16 %v9409_v37, %v9404_v24  ;;  %v2421_v24 = vand.u32 4294901760, %v2418_v4  ;;  %v2424_v37 = vand.u32 4294901760, %v2419_v43 }
 0x120   :  { %8133 = vmatprep.subr.bf16.mxu1 %v9256_v41 }
 0x121   :  { %6794 = vmatmul.mubr.f32.vlgmr.msra.gmra.mrb[2].mxu0 %v9411_v33  ;;  %v9559_v42 = vsub.f32 %v2418_v4, %v2421_v24  ;;  %v9561_v49 = vsub.f32 %v2419_v43, %v2424_v37  ;;  %v8376_v53 = vpack.c.bf16 %v2424_v37, %v2421_v24 }
 0x122   :  { %8035 = vmatpush3.bf16.msra.mxu0 %v9381_v32  ;;  %6828 = vmatprep.mubr.f32.mxu0 %v9433_v57  ;;  %v9536_v57 = vpack.c.bf16 %v9430_v56, %v9422_v40  ;;  %v9554_v40 = vpack.c.bf16 %v9452_v11, %v9447_v25  ;;  %v1233_v56 = vand.u32 4294901760, %v9542_v0  ;;  %v9570_v25 = vsub.f32 %v9547_v1, %v1236_v15 }
 0x123   :  { %8135 = vmatpush3.bf16.msra.mxu1 %v9256_v41  ;;  %8037 = vmatprep.subr.bf16.mxu0 %v9514_v12  ;;  %v2510_v11 = vand.u32 4294901760, %v9559_v42  ;;  %v2517_v50 = vand.u32 4294901760, %v9561_v49  ;;  %v8384_v37 = vpack.c.bf16 %v9561_v49, %v9559_v42 }
 0x124   :  { %8137 = vmatprep.subr.bf16.mxu1 %v9277_v46  ;;  %v9567_v55 = vsub.f32 %v9542_v0, %v1233_v56  ;;  %v1329_v58 = vand.u32 4294901760, %v9570_v25  ;;  %v8160_v0 = vpack.c.bf16 %v1236_v15, %v1233_v56 }
 0x125   :  { %v2511_v28 = vsub.f32 %v9559_v42, %v2510_v11  ;;  %v2518_v5 = vsub.f32 %v9561_v49, %v2517_v50 }
 0x126   :  { %8039 = vmatpush3.bf16.msra.mxu0 %v9514_v12  ;;  %v1322_v35 = vand.u32 4294901760, %v9567_v55  ;;  %v1330_v21 = vsub.f32 %v9570_v25, %v1329_v58 }
 0x127   :  { %8139 = vmatpush3.bf16.msra.mxu1 %v9277_v46  ;;  %8041 = vmatprep.subr.bf16.mxu0 %v9524_v20  ;;  %v2512_v9 = vand.u32 4294901760, %v2511_v28  ;;  %v2519_v4 = vand.u32 4294901760, %v2518_v5 }
 0x128   :  { %8141 = vmatprep.subr.bf16.mxu1 %v9299_v51  ;;  %v1323_v45 = vsub.f32 %v9567_v55, %v1322_v35  ;;  %v1331_v1 = vand.u32 4294901760, %v1330_v21 }
 0x129   :  { %v8380_v27 = vpack.c.bf16 %v2519_v4, %v2512_v9 }
 0x12a   :  { %8043 = vmatpush3.bf16.msra.mxu0 %v9524_v20  ;;  %v1324_v43 = vand.u32 4294901760, %v1323_v45 }
 0x12b   :  { %8143 = vmatpush3.bf16.msra.mxu1 %v9299_v51  ;;  %8045 = vmatprep.subr.bf16.mxu0 %v9536_v57 }
 0x12c   :  { %8145 = vmatprep.subr.bf16.mxu1 %v9311_v54  ;;  %v8164_v24 = vpack.c.bf16 %v1331_v1, %v1324_v43 }
 0x12e   :  { %8047 = vmatpush3.bf16.msra.mxu0 %v9536_v57 }
 0x12f   :  { %8147 = vmatpush3.bf16.msra.mxu1 %v9311_v54  ;;  %8049 = vmatprep.subr.bf16.mxu0 %v9554_v40 }
 0x130   :  { %8149 = vmatprep.subr.bf16.mxu1 %v9327_v59 }
 0x132   :  { %8051 = vmatpush3.bf16.msra.mxu0 %v9554_v40 }
 0x133   :  { %8151 = vmatpush3.bf16.msra.mxu1 %v9327_v59  ;;  %8053 = vmatprep.subr.bf16.mxu0 %v9383_v3 }
 0x134   :  { %8153 = vmatprep.subr.bf16.mxu1 %v9339_v2 }
 0x136   :  { %8055 = vmatpush3.bf16.msra.mxu0 %v9383_v3 }
 0x137   :  { %8155 = vmatpush3.bf16.msra.mxu1 %v9339_v2  ;;  %8057 = vmatprep.subr.bf16.mxu0 %v9385_v52 }
 0x138   :  { %8157 = vmatprep.subr.bf16.mxu1 %v9351_v8 }
 0x13a   :  { %8059 = vmatpush3.bf16.msra.mxu0 %v9385_v52 }
 0x13b   :  { %8159 = vmatpush3.bf16.msra.mxu1 %v9351_v8  ;;  %8061 = vmatprep.subr.bf16.mxu0 %v9387_v48 }
 0x13c   :  { %8377 = vmatprep.subr.bf16.mxu1 %v8376_v53 }
 0x13e   :  { %6934 = vmatmul.mubr.f32.vlgmr.msra.gmra.mrb[2].mxu1 %v9411_v33  ;;  %8063 = vmatpush3.bf16.msra.mxu0 %v9387_v48  ;;  %v8168_v33 = vpack.c.bf16 %v9570_v25, %v9567_v55 }
 0x13f   :  { %8379 = vmatpush3.bf16.msra.mxu1 %v8376_v53  ;;  %7192 = vmatprep.mubr.f32.mxu1 %v9197_v26 }
 0x140   :  { %8161 = vmatprep.subr.bf16.mxu0 %v8160_v0  ;;  %8381 = vmatprep.subr.bf16.mxu1 %v8380_v27 }
 0x141   :  { %6829 = vmatmul.mubr.f32.vlgmr.msra.gmra.mrb[2].mxu0 %v9425_v22  ;;  %v8176_v22 = vpack.c.bf16 %v1329_v58, %v1322_v35 }
 0x142   :  { %7193 = vmatmul.mubr.f32.vlgmr.msra.gmra.mrb[4].mxu1 %v9210_v29  ;;  %8163 = vmatpush3.bf16.msra.mxu0 %v8160_v0 }
 0x143   :  { %6940 = vmatprep.mubr.f32.mxu0 %v9197_v26  ;;  %8165 = vmatprep.subr.bf16.mxu0 %v8164_v24 }
 0x144   :  { %8383 = vmatpush3.bf16.msra.mxu1 %v8380_v27  ;;  %7199 = vmatprep.mubr.f32.mxu1 %v9173_v7  ;;  %v8392_v27 = vpack.c.bf16 %v2517_v50, %v2510_v11 }
 0x145   :  { %6941 = vmatmul.mubr.f32.vlgmr.msra.gmra.mrb[4].mxu0 %v9210_v29  ;;  %8385 = vmatprep.subr.bf16.mxu1 %v8384_v37 }
 0x146   :  { %8167 = vmatpush3.bf16.msra.mxu0 %v8164_v24  ;;  %6947 = vmatprep.mubr.f32.mxu0 %v9173_v7 }
 0x147   :  { %8169 = vmatprep.subr.bf16.mxu0 %v8168_v33 }
 0x14a   :  { %7200 = vmatmul.mubr.f32.vlgmr.msra.gmra.mrb[4].mxu1 %v9175_v10 }
 0x14b   :  { %8387 = vmatpush3.bf16.msra.mxu1 %v8384_v37  ;;  %7206 = vmatprep.mubr.f32.mxu1 %v9180_v13 }
 0x14c   :  { %8389 = vmatprep.subr.bf16.mxu1 %v8376_v53 }
 0x14d   :  { %6948 = vmatmul.mubr.f32.vlgmr.msra.gmra.mrb[4].mxu0 %v9175_v10 }
 0x14e   :  { %8171 = vmatpush3.bf16.msra.mxu0 %v8168_v33  ;;  %6954 = vmatprep.mubr.f32.mxu0 %v9180_v13 }
 0x14f   :  { %8173 = vmatprep.subr.bf16.mxu0 %v8160_v0 }
 0x152   :  { %7207 = vmatmul.mubr.f32.vlgmr.msra.gmra.mrb[4].mxu1 %v9183_v14 }
 0x153   :  { %8391 = vmatpush3.bf16.msra.mxu1 %v8376_v53  ;;  %7213 = vmatprep.mubr.f32.mxu1 %v9186_v17 }
 0x154   :  { %8393 = vmatprep.subr.bf16.mxu1 %v8392_v27 }
 0x155   :  { %6955 = vmatmul.mubr.f32.vlgmr.msra.gmra.mrb[4].mxu0 %v9183_v14 }
 0x156   :  { %8175 = vmatpush3.bf16.msra.mxu0 %v8160_v0  ;;  %6961 = vmatprep.mubr.f32.mxu0 %v9186_v17 }
 0x157   :  { %8177 = vmatprep.subr.bf16.mxu0 %v8176_v22 }
 0x15a   :  { %7214 = vmatmul.mubr.f32.vlgmr.msra.gmra.mrb[4].mxu1 %v9189_v18 }
 0x15b   :  { %8395 = vmatpush3.bf16.msra.mxu1 %v8392_v27  ;;  %7220 = vmatprep.mubr.f32.mxu1 %v9173_v7 }
 0x15c   :  { %8397 = vmatprep.subr.bf16.mxu1 %v8376_v53 }
 0x15d   :  { %6962 = vmatmul.mubr.f32.vlgmr.msra.gmra.mrb[4].mxu0 %v9189_v18 }
 0x15e   :  { %8179 = vmatpush3.bf16.msra.mxu0 %v8176_v22  ;;  %6968 = vmatprep.mubr.f32.mxu0 %v9173_v7 }
 0x15f   :  { %8181 = vmatprep.subr.bf16.mxu0 %v8160_v0 }
 0x162   :  { %7221 = vmatmul.mubr.f32.vlgmr.msra.gmra.mrb[4].mxu1 %v9175_v10 }
 0x163   :  { %8399 = vmatpush3.bf16.msra.mxu1 %v8376_v53  ;;  %7227 = vmatprep.mubr.f32.mxu1 %v9173_v7 }
 0x164   :  { %8401 = vmatprep.subr.bf16.mxu1 %v9222_v34 }
 0x165   :  { %6969 = vmatmul.mubr.f32.vlgmr.msra.gmra.mrb[4].mxu0 %v9175_v10 }
 0x166   :  { %8183 = vmatpush3.bf16.msra.mxu0 %v8160_v0  ;;  %6975 = vmatprep.mubr.f32.mxu0 %v9173_v7 }
 0x167   :  { %8185 = vmatprep.subr.bf16.mxu0 %v9222_v34 }
 0x16a   :  { %7228 = vmatmul.mubr.f32.vlgmr.msra.gmra.mrb[4].mxu1 %v9175_v10 }
 0x16b   :  { %8403 = vmatpush3.bf16.msra.mxu1 %v9222_v34 }
 0x16c   :  { %8405 = vmatprep.subr.bf16.mxu1 %v9256_v41 }
 0x16d   :  { %6976 = vmatmul.mubr.f32.vlgmr.msra.gmra.mrb[4].mxu0 %v9175_v10 }
 0x16e   :  { %8187 = vmatpush3.bf16.msra.mxu0 %v9222_v34 }
 0x16f   :  { %8407 = vmatpush3.bf16.msra.mxu1 %v9256_v41  ;;  %8189 = vmatprep.subr.bf16.mxu0 %v9256_v41 }
 0x170   :  { %8409 = vmatprep.subr.bf16.mxu1 %v9277_v46 }
 0x172   :  { %8191 = vmatpush3.bf16.msra.mxu0 %v9256_v41 }
 0x173   :  { %8411 = vmatpush3.bf16.msra.mxu1 %v9277_v46  ;;  %8193 = vmatprep.subr.bf16.mxu0 %v9277_v46 }
 0x174   :  { %8413 = vmatprep.subr.bf16.mxu1 %v9299_v51 }
 0x176   :  { %8195 = vmatpush3.bf16.msra.mxu0 %v9277_v46 }
 0x177   :  { %8415 = vmatpush3.bf16.msra.mxu1 %v9299_v51  ;;  %8197 = vmatprep.subr.bf16.mxu0 %v9299_v51 }
 0x178   :  { %8417 = vmatprep.subr.bf16.mxu1 %v9311_v54 }
 0x17a   :  { %8199 = vmatpush3.bf16.msra.mxu0 %v9299_v51 }
 0x17b   :  { %8419 = vmatpush3.bf16.msra.mxu1 %v9311_v54  ;;  %8201 = vmatprep.subr.bf16.mxu0 %v9311_v54 }
 0x17c   :  { %8421 = vmatprep.subr.bf16.mxu1 %v9327_v59 }
 0x17e   :  { %8203 = vmatpush3.bf16.msra.mxu0 %v9311_v54 }
 0x17f   :  { %8423 = vmatpush3.bf16.msra.mxu1 %v9327_v59  ;;  %8205 = vmatprep.subr.bf16.mxu0 %v9327_v59 }
 0x180   :  { %8425 = vmatprep.subr.bf16.mxu1 %v9339_v2 }
 0x182   :  { %8207 = vmatpush3.bf16.msra.mxu0 %v9327_v59 }
 0x183   :  { %8427 = vmatpush3.bf16.msra.mxu1 %v9339_v2  ;;  %8209 = vmatprep.subr.bf16.mxu0 %v9339_v2 }
 0x184   :  { %8429 = vmatprep.subr.bf16.mxu1 %v9351_v8 }
 0x186   :  { %8211 = vmatpush3.bf16.msra.mxu0 %v9339_v2 }
 0x187   :  { %8431 = vmatpush3.bf16.msra.mxu1 %v9351_v8  ;;  %8213 = vmatprep.subr.bf16.mxu0 %v9351_v8 }
 0x188   :  { %8433 = vmatprep.subr.bf16.mxu1 %v9366_v23 }
 0x18a   :  { %8215 = vmatpush3.bf16.msra.mxu0 %v9351_v8 }
 0x18b   :  { %8217 = vmatprep.subr.bf16.mxu0 %v9366_v23 }
 0x211   :  { %v6935_v0 = vpop.f32.mrb[2].mxu1 }
 0x212   :  { %v1222_v1 = vpop.f32.mrb[3].mxu1 }
 0x214   :  { %v6830_v56 = vpop.f32.mrb[2].mxu0 }
 0x215   :  { %v9657_v15 = vadd.f32 %v6935_v0, %v6830_v56  ;;  %v906_v42 = vpop.f32.mrb[3].mxu0 }
 0x216   :  { %v9659_v49 = vadd.f32 %v1222_v1, %v906_v42 }
 0x23d   :  { %v7229_v55 = vpop.f32.mrb[4].mxu1 }
 0x23e   :  { %v9661_v25 = vand.u32 4294901760, %v7229_v55  ;;  %v2912_v11 = vpop.f32.mrb[5].mxu1 }
 0x23f   :  { %v9663_v50 = vand.u32 4294901760, %v2912_v11 }
 0x240   :  { %v9666_v35 = vsub.f32 %v7229_v55, %v9661_v25  ;;  %v6977_v58 = vpop.f32.mrb[4].mxu0 }
 0x241   :  { %v9669_v28 = vsub.f32 %v2912_v11, %v9663_v50  ;;  %v9671_v5 = vand.u32 4294901760, %v6977_v58  ;;  %v1724_v45 = vpop.f32.mrb[5].mxu0  ;;  %v10272_v11 = vld [vmem:[#allocation4_spill] sm:$0xff] }
 0x242   :  { %v3015_v21 = vand.u32 4294901760, %v9666_v35  ;;  %v9674_v53 = vand.u32 4294901760, %v1724_v45 }
 0x243   :  { %v3005_v9 = vand.u32 4294901760, %v9669_v28  ;;  %v9678_v4 = vsub.f32 %v6977_v58, %v9671_v5 }
 0x244   :  { %v3016_v43 = vsub.f32 %v9666_v35, %v3015_v21  ;;  %v9684_v24 = vsub.f32 %v1724_v45, %v9674_v53  ;;  %v10274_v45 = vld [vmem:[#allocation6_spill] sm:$0xff] }
 0x245   :  { %v1827_v37 = vand.u32 4294901760, %v9678_v4  ;;  %v3006_v33 = vsub.f32 %v9669_v28, %v3005_v9 }
 0x246   :  { %v1817_v27 = vand.u32 4294901760, %v9684_v24  ;;  %v3017_v1 = vand.u32 4294901760, %v3016_v43 }
 0x247   :  { %v1828_v22 = vsub.f32 %v9678_v4, %v1827_v37  ;;  %v3007_v0 = vand.u32 4294901760, %v3006_v33 }
 0x248   :  { %v1818_v56 = vsub.f32 %v9684_v24, %v1817_v27 }
 0x249   :  { %7262 = vmatprep.mubr.f32.mxu1 %v3007_v0  ;;  %v1829_v55 = vand.u32 4294901760, %v1828_v22 }
 0x24a   :  { %7263 = vmatmul.mubr.f32.vlgmr.msra.gmra.mrb[6].mxu1 %v3017_v1  ;;  %v1819_v42 = vand.u32 4294901760, %v1818_v56 }
 0x24b   :  { %8435 = vmatpush3.bf16.msra.mxu1 %v9366_v23  ;;  %7297 = vmatprep.mubr.f32.mxu1 %v9663_v50 }
 0x24c   :  { %7010 = vmatprep.mubr.f32.mxu0 %v1819_v42  ;;  %8437 = vmatprep.subr.bf16.mxu1 %v9455_v38 }
 0x24d   :  { %7011 = vmatmul.mubr.f32.vlgmr.msra.gmra.mrb[6].mxu0 %v1829_v55 }
 0x24e   :  { %8219 = vmatpush3.bf16.msra.mxu0 %v9366_v23  ;;  %7045 = vmatprep.mubr.f32.mxu0 %v9674_v53 }
 0x24f   :  { %8439 = vmatpush3.bf16.msra.mxu1 %v9455_v38  ;;  %8221 = vmatprep.subr.bf16.mxu0 %v9455_v38 }
 0x250   :  { %8441 = vmatprep.subr.bf16.mxu1 %v9468_v63 }
 0x252   :  { %8223 = vmatpush3.bf16.msra.mxu0 %v9455_v38 }
 0x253   :  { %8443 = vmatpush3.bf16.msra.mxu1 %v9468_v63  ;;  %8225 = vmatprep.subr.bf16.mxu0 %v9468_v63 }
 0x254   :  { %8445 = vmatprep.subr.bf16.mxu1 %v9481_v39 }
 0x256   :  { %8227 = vmatpush3.bf16.msra.mxu0 %v9468_v63 }
 0x257   :  { %8447 = vmatpush3.bf16.msra.mxu1 %v9481_v39  ;;  %8229 = vmatprep.subr.bf16.mxu0 %v9481_v39 }
 0x258   :  { %8449 = vmatprep.subr.bf16.mxu1 %v9489_v36 }
 0x25a   :  { %8231 = vmatpush3.bf16.msra.mxu0 %v9481_v39 }
 0x25b   :  { %8451 = vmatpush3.bf16.msra.mxu1 %v9489_v36  ;;  %8233 = vmatprep.subr.bf16.mxu0 %v9489_v36 }
 0x25c   :  { %8453 = vmatprep.subr.bf16.mxu1 %v9371_v19 }
 0x25e   :  { %8235 = vmatpush3.bf16.msra.mxu0 %v9489_v36 }
 0x25f   :  { %8455 = vmatpush3.bf16.msra.mxu1 %v9371_v19  ;;  %8237 = vmatprep.subr.bf16.mxu0 %v9371_v19 }
 0x260   :  { %8457 = vmatprep.subr.bf16.mxu1 %v9377_v62 }
 0x262   :  { %8239 = vmatpush3.bf16.msra.mxu0 %v9371_v19 }
 0x263   :  { %8459 = vmatpush3.bf16.msra.mxu1 %v9377_v62  ;;  %8241 = vmatprep.subr.bf16.mxu0 %v9377_v62 }
 0x264   :  { %8461 = vmatprep.subr.bf16.mxu1 %v9379_v31 }
 0x266   :  { %8243 = vmatpush3.bf16.msra.mxu0 %v9377_v62 }
 0x267   :  { %8463 = vmatpush3.bf16.msra.mxu1 %v9379_v31  ;;  %8245 = vmatprep.subr.bf16.mxu0 %v9379_v31 }
 0x268   :  { %8465 = vmatprep.subr.bf16.mxu1 %v9381_v32 }
 0x26a   :  { %7298 = vmatmul.mubr.f32.vlgmr.msra.gmra.mrb[6].mxu1 %v9661_v25  ;;  %8247 = vmatpush3.bf16.msra.mxu0 %v9379_v31 }
 0x26b   :  { %8467 = vmatpush3.bf16.msra.mxu1 %v9381_v32  ;;  %7332 = vmatprep.mubr.f32.mxu1 %v9669_v28  ;;  %v9129_v28 = vld [vmem:[%s10241_s2 + $0x8] sm:$0xff] }
 0x26c   :  { %8249 = vmatprep.subr.bf16.mxu0 %v9381_v32  ;;  %8469 = vmatprep.subr.bf16.mxu1 %v9514_v12 }
 0x26d   :  { %7046 = vmatmul.mubr.f32.vlgmr.msra.gmra.mrb[6].mxu0 %v9671_v5 }
 0x26e   :  { %8251 = vmatpush3.bf16.msra.mxu0 %v9381_v32  ;;  %7080 = vmatprep.mubr.f32.mxu0 %v9684_v24 }
 0x26f   :  { %8471 = vmatpush3.bf16.msra.mxu1 %v9514_v12  ;;  %8253 = vmatprep.subr.bf16.mxu0 %v9514_v12 }
 0x270   :  { %8473 = vmatprep.subr.bf16.mxu1 %v9524_v20 }
 0x272   :  { %8255 = vmatpush3.bf16.msra.mxu0 %v9514_v12 }
 0x273   :  { %8475 = vmatpush3.bf16.msra.mxu1 %v9524_v20  ;;  %8257 = vmatprep.subr.bf16.mxu0 %v9524_v20 }
 0x274   :  { %8477 = vmatprep.subr.bf16.mxu1 %v9536_v57 }
 0x276   :  { %8259 = vmatpush3.bf16.msra.mxu0 %v9524_v20 }
 0x277   :  { %8479 = vmatpush3.bf16.msra.mxu1 %v9536_v57  ;;  %8261 = vmatprep.subr.bf16.mxu0 %v9536_v57 }
 0x278   :  { %8481 = vmatprep.subr.bf16.mxu1 %v9554_v40 }
 0x27a   :  { %8263 = vmatpush3.bf16.msra.mxu0 %v9536_v57 }
 0x27b   :  { %8483 = vmatpush3.bf16.msra.mxu1 %v9554_v40  ;;  %8265 = vmatprep.subr.bf16.mxu0 %v9554_v40 }
 0x27c   :  { %8485 = vmatprep.subr.bf16.mxu1 %v9383_v3 }
 0x27e   :  { %8267 = vmatpush3.bf16.msra.mxu0 %v9554_v40 }
 0x27f   :  { %8487 = vmatpush3.bf16.msra.mxu1 %v9383_v3  ;;  %8269 = vmatprep.subr.bf16.mxu0 %v9383_v3 }
 0x280   :  { %8489 = vmatprep.subr.bf16.mxu1 %v9385_v52 }
 0x282   :  { %8271 = vmatpush3.bf16.msra.mxu0 %v9383_v3 }
 0x283   :  { %8491 = vmatpush3.bf16.msra.mxu1 %v9385_v52  ;;  %8273 = vmatprep.subr.bf16.mxu0 %v9385_v52 }
 0x284   :  { %8493 = vmatprep.subr.bf16.mxu1 %v9387_v48 }
 0x286   :  { %8275 = vmatpush3.bf16.msra.mxu0 %v9385_v52 }
 0x287   :  { %8495 = vmatpush3.bf16.msra.mxu1 %v9387_v48  ;;  %8277 = vmatprep.subr.bf16.mxu0 %v9387_v48 }
 0x288   :  { %8497 = vmatprep.subr.bf16.mxu1 %v9222_v34 }
 0x28a   :  { %7333 = vmatmul.mubr.f32.vlgmr.msra.gmra.mrb[6].mxu1 %v9666_v35  ;;  %8279 = vmatpush3.bf16.msra.mxu0 %v9387_v48  ;;  %v10273_v35 = vld [vmem:[#allocation5_spill] sm:$0xff] }
 0x28b   :  { %8499 = vmatpush3.bf16.msra.mxu1 %v9222_v34  ;;  %7367 = vmatprep.mubr.f32.mxu1 %v3005_v9  ;;  %v3607_v9 = vmul.f32 %v10274_v45, %v10274_v45 }
 0x28c   :  { %8281 = vmatprep.subr.bf16.mxu0 %v9222_v34  ;;  %8501 = vmatprep.subr.bf16.mxu1 %v9256_v41 }
 0x28d   :  { %7081 = vmatmul.mubr.f32.vlgmr.msra.gmra.mrb[6].mxu0 %v9678_v4 }
 0x28e   :  { %8283 = vmatpush3.bf16.msra.mxu0 %v9222_v34  ;;  %7115 = vmatprep.mubr.f32.mxu0 %v1817_v27 }
 0x28f   :  { %8503 = vmatpush3.bf16.msra.mxu1 %v9256_v41  ;;  %8285 = vmatprep.subr.bf16.mxu0 %v9256_v41 }
 0x290   :  { %8505 = vmatprep.subr.bf16.mxu1 %v9277_v46 }
 0x292   :  { %8287 = vmatpush3.bf16.msra.mxu0 %v9256_v41 }
 0x293   :  { %8507 = vmatpush3.bf16.msra.mxu1 %v9277_v46  ;;  %8289 = vmatprep.subr.bf16.mxu0 %v9277_v46 }
 0x294   :  { %8509 = vmatprep.subr.bf16.mxu1 %v9299_v51 }
 0x296   :  { %8291 = vmatpush3.bf16.msra.mxu0 %v9277_v46 }
 0x297   :  { %8511 = vmatpush3.bf16.msra.mxu1 %v9299_v51  ;;  %8293 = vmatprep.subr.bf16.mxu0 %v9299_v51 }
 0x298   :  { %8513 = vmatprep.subr.bf16.mxu1 %v9311_v54 }
 0x29a   :  { %8295 = vmatpush3.bf16.msra.mxu0 %v9299_v51 }
 0x29b   :  { %8515 = vmatpush3.bf16.msra.mxu1 %v9311_v54  ;;  %8297 = vmatprep.subr.bf16.mxu0 %v9311_v54 }
 0x29c   :  { %8517 = vmatprep.subr.bf16.mxu1 %v9327_v59 }
 0x29e   :  { %8299 = vmatpush3.bf16.msra.mxu0 %v9311_v54 }
 0x29f   :  { %8519 = vmatpush3.bf16.msra.mxu1 %v9327_v59  ;;  %8301 = vmatprep.subr.bf16.mxu0 %v9327_v59 }
 0x2a0   :  { %8521 = vmatprep.subr.bf16.mxu1 %v9339_v2 }
 0x2a2   :  { %8303 = vmatpush3.bf16.msra.mxu0 %v9327_v59 }
 0x2a3   :  { %8523 = vmatpush3.bf16.msra.mxu1 %v9339_v2  ;;  %8305 = vmatprep.subr.bf16.mxu0 %v9339_v2 }
 0x2a4   :  { %8525 = vmatprep.subr.bf16.mxu1 %v9351_v8 }
 0x2a6   :  { %8307 = vmatpush3.bf16.msra.mxu0 %v9339_v2 }
 0x2a7   :  { %8527 = vmatpush3.bf16.msra.mxu1 %v9351_v8  ;;  %8309 = vmatprep.subr.bf16.mxu0 %v9351_v8 }
 0x2a8   :  { %8529 = vmatprep.subr.bf16.mxu1 %v9363_v16 }
 0x2aa   :  { %7368 = vmatmul.mubr.f32.vlgmr.msra.gmra.mrb[6].mxu1 %v3015_v21  ;;  %8311 = vmatpush3.bf16.msra.mxu0 %v9351_v8  ;;  %v4795_v21 = vmul.f32 %v9129_v28, %v10274_v45 }
 0x2ab   :  { %8531 = vmatpush3.bf16.msra.mxu1 %v9363_v16  ;;  %7402 = vmatprep.mubr.f32.mxu1 %v9663_v50 }
 0x2ac   :  { %8313 = vmatprep.subr.bf16.mxu0 %v9363_v16  ;;  %8533 = vmatprep.subr.bf16.mxu1 %v9436_v60  ;;  %v4800_v43 = vand.u32 4294901760, %v4795_v21 }
 0x2ad   :  { %7116 = vmatmul.mubr.f32.vlgmr.msra.gmra.mrb[6].mxu0 %v1827_v37  ;;  %v3612_v37 = vand.u32 4294901760, %v3607_v9 }
 0x2ae   :  { %8315 = vmatpush3.bf16.msra.mxu0 %v9363_v16  ;;  %7150 = vmatprep.mubr.f32.mxu0 %v9674_v53  ;;  %v9875_v27 = vsub.f32 %v4795_v21, %v4800_v43 }
 0x2af   :  { %8535 = vmatpush3.bf16.msra.mxu1 %v9436_v60  ;;  %8317 = vmatprep.subr.bf16.mxu0 %v9436_v60  ;;  %v9882_v0 = vsub.f32 %v3607_v9, %v3612_v37 }
 0x2b0   :  { %8537 = vmatprep.subr.bf16.mxu1 %v9464_v61  ;;  %v4893_v56 = vand.u32 4294901760, %v9875_v27 }
 0x2b1   :  { %v3705_v55 = vand.u32 4294901760, %v9882_v0 }
 0x2b2   :  { %8319 = vmatpush3.bf16.msra.mxu0 %v9436_v60 }
 0x2b3   :  { %8539 = vmatpush3.bf16.msra.mxu1 %v9464_v61  ;;  %8321 = vmatprep.subr.bf16.mxu0 %v9464_v61  ;;  %v3706_v28 = vsub.f32 %v9882_v0, %v3705_v55 }
 0x2b4   :  { %8541 = vmatprep.subr.bf16.mxu1 %v9470_v44 }
 0x2b6   :  { %8323 = vmatpush3.bf16.msra.mxu0 %v9464_v61 }
 0x2b7   :  { %8543 = vmatpush3.bf16.msra.mxu1 %v9470_v44  ;;  %8325 = vmatprep.subr.bf16.mxu0 %v9470_v44 }
 0x2b8   :  { %8545 = vmatprep.subr.bf16.mxu1 %v9483_v6 }
 0x2ba   :  { %8327 = vmatpush3.bf16.msra.mxu0 %v9470_v44 }
 0x2bb   :  { %8547 = vmatpush3.bf16.msra.mxu1 %v9483_v6  ;;  %8329 = vmatprep.subr.bf16.mxu0 %v9483_v6 }
 0x2bc   :  { %8549 = vmatprep.subr.bf16.mxu1 %v9369_v30 }
 0x2be   :  { %8331 = vmatpush3.bf16.msra.mxu0 %v9483_v6 }
 0x2bf   :  { %8551 = vmatpush3.bf16.msra.mxu1 %v9369_v30  ;;  %8333 = vmatprep.subr.bf16.mxu0 %v9369_v30 }
 0x2c0   :  { %8553 = vmatprep.subr.bf16.mxu1 %v9373_v47 }
 0x2c2   :  { %8335 = vmatpush3.bf16.msra.mxu0 %v9369_v30 }
 0x2c3   :  { %8555 = vmatpush3.bf16.msra.mxu1 %v9373_v47  ;;  %8337 = vmatprep.subr.bf16.mxu0 %v9373_v47 }
 0x2c4   :  { %8557 = vmatprep.subr.bf16.mxu1 %v10272_v11 }
 0x2c6   :  { %8339 = vmatpush3.bf16.msra.mxu0 %v9373_v47 }
 0x2c7   :  { %8559 = vmatpush3.bf16.msra.mxu1 %v10272_v11  ;;  %8341 = vmatprep.subr.bf16.mxu0 %v10272_v11 }
 0x2c8   :  { %8561 = vmatprep.subr.bf16.mxu1 %v9222_v34 }
 0x2ca   :  { %7403 = vmatmul.mubr.f32.vlgmr.msra.gmra.mrb[6].mxu1 %v9661_v25  ;;  %8343 = vmatpush3.bf16.msra.mxu0 %v10272_v11  ;;  %v3707_v11 = vand.u32 4294901760, %v3706_v28 }
 0x2cb   :  { %8563 = vmatpush3.bf16.msra.mxu1 %v9222_v34  ;;  %7437 = vmatprep.mubr.f32.mxu1 %v9663_v50  ;;  %v9128_v50 = vld [vmem:[%s10241_s2] sm:$0xff] }
 0x2cc   :  { %8345 = vmatprep.subr.bf16.mxu0 %v9222_v34  ;;  %8565 = vmatprep.subr.bf16.mxu1 %v9256_v41  ;;  %v4794_v58 = vmul.f32 %v9128_v50, %v10273_v35 }
 0x2cd   :  { %7151 = vmatmul.mubr.f32.vlgmr.msra.gmra.mrb[6].mxu0 %v9671_v5 }
 0x2ce   :  { %8347 = vmatpush3.bf16.msra.mxu0 %v9222_v34  ;;  %7185 = vmatprep.mubr.f32.mxu0 %v9674_v53  ;;  %v3606_v53 = vmul.f32 %v10273_v35, %v10273_v35  ;;  %v4797_v4 = vand.u32 4294901760, %v4794_v58  ;;  %v4894_v35 = vsub.f32 %v9875_v27, %v4893_v56 }
 0x2cf   :  { %8567 = vmatpush3.bf16.msra.mxu1 %v9256_v41  ;;  %8349 = vmatprep.subr.bf16.mxu0 %v9256_v41 }
 0x2d0   :  { %8569 = vmatprep.subr.bf16.mxu1 %v9277_v46  ;;  %v3609_v24 = vand.u32 4294901760, %v3606_v53  ;;  %v9873_v33 = vsub.f32 %v4794_v58, %v4797_v4  ;;  %v8808_v45 = vpack.c.bf16 %v4800_v43, %v4797_v4 }
 0x2d2   :  { %8351 = vmatpush3.bf16.msra.mxu0 %v9256_v41  ;;  %v9880_v22 = vsub.f32 %v3606_v53, %v3609_v24  ;;  %v4886_v1 = vand.u32 4294901760, %v9873_v33  ;;  %v4895_v53 = vand.u32 4294901760, %v4894_v35  ;;  %v8592_v47 = vpack.c.bf16 %v3612_v37, %v3609_v24 }
 0x2d3   :  { %8571 = vmatpush3.bf16.msra.mxu1 %v9277_v46  ;;  %8353 = vmatprep.subr.bf16.mxu0 %v9277_v46  ;;  %v8816_v43 = vpack.c.bf16 %v9875_v27, %v9873_v33 }
 0x2d4   :  { %8573 = vmatprep.subr.bf16.mxu1 %v9299_v51  ;;  %v3698_v42 = vand.u32 4294901760, %v9880_v22  ;;  %v4887_v50 = vsub.f32 %v9873_v33, %v4886_v1 }
 0x2d6   :  { %8355 = vmatpush3.bf16.msra.mxu0 %v9277_v46  ;;  %v3699_v58 = vsub.f32 %v9880_v22, %v3698_v42  ;;  %v4888_v21 = vand.u32 4294901760, %v4887_v50 }
 0x2d7   :  { %8575 = vmatpush3.bf16.msra.mxu1 %v9299_v51  ;;  %8357 = vmatprep.subr.bf16.mxu0 %v9299_v51 }
 0x2d8   :  { %8577 = vmatprep.subr.bf16.mxu1 %v9311_v54  ;;  %v3700_v9 = vand.u32 4294901760, %v3699_v58  ;;  %v8812_v30 = vpack.c.bf16 %v4895_v53, %v4888_v21 }
 0x2da   :  { %8359 = vmatpush3.bf16.msra.mxu0 %v9299_v51  ;;  %v8596_v4 = vpack.c.bf16 %v3707_v11, %v3700_v9 }
 0x2db   :  { %8579 = vmatpush3.bf16.msra.mxu1 %v9311_v54  ;;  %8361 = vmatprep.subr.bf16.mxu0 %v9311_v54 }
 0x2dc   :  { %8581 = vmatprep.subr.bf16.mxu1 %v9327_v59 }
 0x2de   :  { %8363 = vmatpush3.bf16.msra.mxu0 %v9311_v54 }
 0x2df   :  { %8583 = vmatpush3.bf16.msra.mxu1 %v9327_v59  ;;  %8365 = vmatprep.subr.bf16.mxu0 %v9327_v59 }
 0x2e0   :  { %8585 = vmatprep.subr.bf16.mxu1 %v9339_v2 }
 0x2e2   :  { %8367 = vmatpush3.bf16.msra.mxu0 %v9327_v59 }
 0x2e3   :  { %8587 = vmatpush3.bf16.msra.mxu1 %v9339_v2  ;;  %8369 = vmatprep.subr.bf16.mxu0 %v9339_v2 }
 0x2e4   :  { %8589 = vmatprep.subr.bf16.mxu1 %v9351_v8 }
 0x2e6   :  { %8371 = vmatpush3.bf16.msra.mxu0 %v9339_v2 }
 0x2e7   :  { %8591 = vmatpush3.bf16.msra.mxu1 %v9351_v8  ;;  %8373 = vmatprep.subr.bf16.mxu0 %v9351_v8 }
 0x2e8   :  { %8809 = vmatprep.subr.bf16.mxu1 %v8808_v45 }
 0x2ea   :  { %7438 = vmatmul.mubr.f32.vlgmr.msra.gmra.mrb[6].mxu1 %v9661_v25  ;;  %8375 = vmatpush3.bf16.msra.mxu0 %v9351_v8  ;;  %v8600_v25 = vpack.c.bf16 %v9882_v0, %v9880_v22 }
 0x2eb   :  { %8811 = vmatpush3.bf16.msra.mxu1 %v8808_v45  ;;  %7696 = vmatprep.mubr.f32.mxu1 %v9197_v26 }
 0x2ec   :  { %8593 = vmatprep.subr.bf16.mxu0 %v8592_v47  ;;  %8813 = vmatprep.subr.bf16.mxu1 %v8812_v30 }
 0x2ed   :  { %7186 = vmatmul.mubr.f32.vlgmr.msra.gmra.mrb[6].mxu0 %v9671_v5 }
 0x2ee   :  { %7697 = vmatmul.mubr.f32.vlgmr.msra.gmra.mrb[8].mxu1 %v9210_v29  ;;  %8595 = vmatpush3.bf16.msra.mxu0 %v8592_v47 }
 0x2ef   :  { %7444 = vmatprep.mubr.f32.mxu0 %v9197_v26  ;;  %8597 = vmatprep.subr.bf16.mxu0 %v8596_v4  ;;  %v8824_v26 = vpack.c.bf16 %v4893_v56, %v4886_v1 }
 0x2f0   :  { %8815 = vmatpush3.bf16.msra.mxu1 %v8812_v30  ;;  %7703 = vmatprep.mubr.f32.mxu1 %v9173_v7 }
 0x2f1   :  { %7445 = vmatmul.mubr.f32.vlgmr.msra.gmra.mrb[8].mxu0 %v9210_v29  ;;  %8817 = vmatprep.subr.bf16.mxu1 %v8816_v43  ;;  %v8608_v29 = vpack.c.bf16 %v3705_v55, %v3698_v42 }
 0x2f2   :  { %8599 = vmatpush3.bf16.msra.mxu0 %v8596_v4  ;;  %7451 = vmatprep.mubr.f32.mxu0 %v9173_v7 }
 0x2f3   :  { %8601 = vmatprep.subr.bf16.mxu0 %v8600_v25 }
 0x2f6   :  { %7704 = vmatmul.mubr.f32.vlgmr.msra.gmra.mrb[8].mxu1 %v9175_v10 }
 0x2f7   :  { %8819 = vmatpush3.bf16.msra.mxu1 %v8816_v43  ;;  %7710 = vmatprep.mubr.f32.mxu1 %v9180_v13 }
 0x2f8   :  { %8821 = vmatprep.subr.bf16.mxu1 %v8808_v45 }
 0x2f9   :  { %7452 = vmatmul.mubr.f32.vlgmr.msra.gmra.mrb[8].mxu0 %v9175_v10 }
 0x2fa   :  { %8603 = vmatpush3.bf16.msra.mxu0 %v8600_v25  ;;  %7458 = vmatprep.mubr.f32.mxu0 %v9180_v13  ;;  %v9977_v13 = vmul.f32 %v9659_v49, %v9659_v49 }
 0x2fb   :  { %8605 = vmatprep.subr.bf16.mxu0 %v8592_v47 }
 0x2fe   :  { %7711 = vmatmul.mubr.f32.vlgmr.msra.gmra.mrb[8].mxu1 %v9183_v14 }
 0x2ff   :  { %8823 = vmatpush3.bf16.msra.mxu1 %v8808_v45  ;;  %7717 = vmatprep.mubr.f32.mxu1 %v9186_v17 }
 0x300   :  { %8825 = vmatprep.subr.bf16.mxu1 %v8824_v26 }
 0x301   :  { %7459 = vmatmul.mubr.f32.vlgmr.msra.gmra.mrb[8].mxu0 %v9183_v14 }
 0x302   :  { %8607 = vmatpush3.bf16.msra.mxu0 %v8592_v47  ;;  %7465 = vmatprep.mubr.f32.mxu0 %v9186_v17 }
 0x303   :  { %8609 = vmatprep.subr.bf16.mxu0 %v8608_v29 }
 0x306   :  { %7718 = vmatmul.mubr.f32.vlgmr.msra.gmra.mrb[8].mxu1 %v9189_v18 }
 0x307   :  { %8827 = vmatpush3.bf16.msra.mxu1 %v8824_v26  ;;  %7724 = vmatprep.mubr.f32.mxu1 %v9173_v7 }
 0x308   :  { %8829 = vmatprep.subr.bf16.mxu1 %v8808_v45 }
 0x309   :  { %7466 = vmatmul.mubr.f32.vlgmr.msra.gmra.mrb[8].mxu0 %v9189_v18 }
 0x30a   :  { %8611 = vmatpush3.bf16.msra.mxu0 %v8608_v29  ;;  %7472 = vmatprep.mubr.f32.mxu0 %v9173_v7 }
 0x30b   :  { %8613 = vmatprep.subr.bf16.mxu0 %v8592_v47 }
 0x30e   :  { %7725 = vmatmul.mubr.f32.vlgmr.msra.gmra.mrb[8].mxu1 %v9175_v10 }
 0x30f   :  { %8831 = vmatpush3.bf16.msra.mxu1 %v8808_v45  ;;  %7731 = vmatprep.mubr.f32.mxu1 %v9173_v7 }
 0x310   :  { %8833 = vmatprep.subr.bf16.mxu1 %v9222_v34 }
 0x311   :  { %7473 = vmatmul.mubr.f32.vlgmr.msra.gmra.mrb[8].mxu0 %v9175_v10 }
 0x312   :  { %8615 = vmatpush3.bf16.msra.mxu0 %v8592_v47  ;;  %7479 = vmatprep.mubr.f32.mxu0 %v9173_v7  ;;  %v9971_v7 = vmul.f32 %v9657_v15, %v9657_v15 }
 0x313   :  { %8617 = vmatprep.subr.bf16.mxu0 %v9222_v34 }
 0x316   :  { %7732 = vmatmul.mubr.f32.vlgmr.msra.gmra.mrb[8].mxu1 %v9175_v10 }
 0x317   :  { %8835 = vmatpush3.bf16.msra.mxu1 %v9222_v34 }
 0x318   :  { %8837 = vmatprep.subr.bf16.mxu1 %v9256_v41 }
 0x319   :  { %7480 = vmatmul.mubr.f32.vlgmr.msra.gmra.mrb[8].mxu0 %v9175_v10 }
 0x31a   :  { %8619 = vmatpush3.bf16.msra.mxu0 %v9222_v34 }
 0x31b   :  { %8839 = vmatpush3.bf16.msra.mxu1 %v9256_v41  ;;  %8621 = vmatprep.subr.bf16.mxu0 %v9256_v41 }
 0x31c   :  { %8841 = vmatprep.subr.bf16.mxu1 %v9277_v46 }
 0x31e   :  { %8623 = vmatpush3.bf16.msra.mxu0 %v9256_v41 }
 0x31f   :  { %8843 = vmatpush3.bf16.msra.mxu1 %v9277_v46  ;;  %8625 = vmatprep.subr.bf16.mxu0 %v9277_v46 }
 0x320   :  { %8845 = vmatprep.subr.bf16.mxu1 %v9299_v51 }
 0x322   :  { %8627 = vmatpush3.bf16.msra.mxu0 %v9277_v46 }
 0x323   :  { %8847 = vmatpush3.bf16.msra.mxu1 %v9299_v51  ;;  %8629 = vmatprep.subr.bf16.mxu0 %v9299_v51 }
 0x324   :  { %8849 = vmatprep.subr.bf16.mxu1 %v9311_v54 }
 0x326   :  { %8631 = vmatpush3.bf16.msra.mxu0 %v9299_v51 }
 0x327   :  { %8851 = vmatpush3.bf16.msra.mxu1 %v9311_v54  ;;  %8633 = vmatprep.subr.bf16.mxu0 %v9311_v54 }
 0x328   :  { %8853 = vmatprep.subr.bf16.mxu1 %v9327_v59 }
 0x32a   :  { %8635 = vmatpush3.bf16.msra.mxu0 %v9311_v54 }
 0x32b   :  { %8855 = vmatpush3.bf16.msra.mxu1 %v9327_v59  ;;  %8637 = vmatprep.subr.bf16.mxu0 %v9327_v59 }
 0x32c   :  { %8857 = vmatprep.subr.bf16.mxu1 %v9339_v2 }
 0x32e   :  { %8639 = vmatpush3.bf16.msra.mxu0 %v9327_v59 }
 0x32f   :  { %8859 = vmatpush3.bf16.msra.mxu1 %v9339_v2  ;;  %8641 = vmatprep.subr.bf16.mxu0 %v9339_v2 }
 0x330   :  { %8861 = vmatprep.subr.bf16.mxu1 %v9351_v8 }
 0x332   :  { %8643 = vmatpush3.bf16.msra.mxu0 %v9339_v2 }
 0x333   :  { %8863 = vmatpush3.bf16.msra.mxu1 %v9351_v8  ;;  %8645 = vmatprep.subr.bf16.mxu0 %v9351_v8 }
 0x334   :  { %8865 = vmatprep.subr.bf16.mxu1 %v9366_v23 }
 0x336   :  { %8647 = vmatpush3.bf16.msra.mxu0 %v9351_v8 }
 0x337   :  { %8649 = vmatprep.subr.bf16.mxu0 %v9366_v23 }
 0x3bd   :  { %v9973_v10 = vpop.f32.mrb[6].mxu1 }
 0x3be   :  { %v5989_v14 = vsub.f32 %v9973_v10, %v9971_v7  ;;  %v9981_v17 = vpop.f32.mrb[7].mxu1 }
 0x3bf   :  { %v5988_v18 = vsub.f32 %v9981_v17, %v9977_v13 }
 0x3c0   :  { %v7187_v47 = vpop.f32.mrb[6].mxu0 }
 0x3c1   :  { %v9985_v30 = vmul.f32 %v7187_v47, %v7187_v47  ;;  %v9988_v5 = vmul.f32 %v9657_v15, %v7187_v47  ;;  %v2408_v11 = vpop.f32.mrb[7].mxu0 }
 0x3c2   :  { %v9990_v24 = vmul.f32 %v2408_v11, %v2408_v11  ;;  %v9993_v37 = vmul.f32 %v9659_v49, %v2408_v11 }
 0x3c3   :  { %v9997_v33 = vadd.f32 %v9985_v30, %v9971_v7 }
 0x3c4   :  { %v10001_v27 = vadd.f32 %v9990_v24, %v9977_v13 }
 0x3e9   :  { %v7733_v22 = vpop.f32.mrb[8].mxu1 }
 0x3ea   :  { %v10003_v0 = vand.u32 4294901760, %v7733_v22  ;;  %v5288_v1 = vpop.f32.mrb[9].mxu1 }
 0x3eb   :  { %v10005_v15 = vand.u32 4294901760, %v5288_v1 }
 0x3ec   :  { %v10008_v56 = vsub.f32 %v7733_v22, %v10003_v0  ;;  %v7481_v42 = vpop.f32.mrb[8].mxu0 }
 0x3ed   :  { %v10011_v49 = vsub.f32 %v5288_v1, %v10005_v15  ;;  %v10013_v55 = vand.u32 4294901760, %v7481_v42  ;;  %v4100_v50 = vpop.f32.mrb[9].mxu0 }
 0x3ee   :  { %v5391_v35 = vand.u32 4294901760, %v10008_v56  ;;  %v10016_v58 = vand.u32 4294901760, %v4100_v50 }
 0x3ef   :  { %v5381_v28 = vand.u32 4294901760, %v10011_v49  ;;  %v10020_v45 = vsub.f32 %v7481_v42, %v10013_v55 }
 0x3f0   :  { %v5392_v21 = vsub.f32 %v10008_v56, %v5391_v35  ;;  %v10026_v53 = vsub.f32 %v4100_v50, %v10016_v58 }
 0x3f1   :  { %v4203_v9 = vand.u32 4294901760, %v10020_v45  ;;  %v5382_v4 = vsub.f32 %v10011_v49, %v5381_v28 }
 0x3f2   :  { %v4193_v43 = vand.u32 4294901760, %v10026_v53  ;;  %v5393_v29 = vand.u32 4294901760, %v5392_v21 }
 0x3f3   :  { %v4204_v25 = vsub.f32 %v10020_v45, %v4203_v9  ;;  %v5383_v26 = vand.u32 4294901760, %v5382_v4 }
 0x3f4   :  { %v4194_v47 = vsub.f32 %v10026_v53, %v4193_v43 }
 0x3f5   :  { %7766 = vmatprep.mubr.f32.mxu1 %v5383_v26  ;;  %v4205_v22 = vand.u32 4294901760, %v4204_v25 }
 0x3f6   :  { %7767 = vmatmul.mubr.f32.vlgmr.msra.gmra.mrb[10].mxu1 %v5393_v29  ;;  %v4195_v11 = vand.u32 4294901760, %v4194_v47 }
 0x3f7   :  { %8867 = vmatpush3.bf16.msra.mxu1 %v9366_v23  ;;  %7801 = vmatprep.mubr.f32.mxu1 %v10005_v15 }
 0x3f8   :  { %7514 = vmatprep.mubr.f32.mxu0 %v4195_v11  ;;  %8869 = vmatprep.subr.bf16.mxu1 %v9455_v38 }
 0x3f9   :  { %7515 = vmatmul.mubr.f32.vlgmr.msra.gmra.mrb[10].mxu0 %v4205_v22 }
 0x3fa   :  { %8651 = vmatpush3.bf16.msra.mxu0 %v9366_v23  ;;  %7549 = vmatprep.mubr.f32.mxu0 %v10016_v58  ;;  %v10276_v23 = vld [vmem:[#allocation3_spill] sm:$0xff] }
 0x3fb   :  { %8871 = vmatpush3.bf16.msra.mxu1 %v9455_v38  ;;  %8653 = vmatprep.subr.bf16.mxu0 %v9455_v38 }
 0x3fc   :  { %8873 = vmatprep.subr.bf16.mxu1 %v9468_v63 }
 0x3fe   :  { %8655 = vmatpush3.bf16.msra.mxu0 %v9455_v38 }
 0x3ff   :  { %8875 = vmatpush3.bf16.msra.mxu1 %v9468_v63  ;;  %8657 = vmatprep.subr.bf16.mxu0 %v9468_v63 }
 0x400   :  { %8877 = vmatprep.subr.bf16.mxu1 %v9481_v39 }
 0x402   :  { %8659 = vmatpush3.bf16.msra.mxu0 %v9468_v63 }
 0x403   :  { %8879 = vmatpush3.bf16.msra.mxu1 %v9481_v39  ;;  %8661 = vmatprep.subr.bf16.mxu0 %v9481_v39 }
 0x404   :  { %8881 = vmatprep.subr.bf16.mxu1 %v9489_v36 }
 0x406   :  { %8663 = vmatpush3.bf16.msra.mxu0 %v9481_v39  ;;  %v6007_v39 = vadd.f32 0.0001, %v9997_v33 }
 0x407   :  { %8883 = vmatpush3.bf16.msra.mxu1 %v9489_v36  ;;  %8665 = vmatprep.subr.bf16.mxu0 %v9489_v36 }
 0x408   :  { %8885 = vmatprep.subr.bf16.mxu1 %v9371_v19 }
 0x40a   :  { %8667 = vmatpush3.bf16.msra.mxu0 %v9489_v36 }
 0x40b   :  { %8887 = vmatpush3.bf16.msra.mxu1 %v9371_v19  ;;  %8669 = vmatprep.subr.bf16.mxu0 %v9371_v19 }
 0x40c   :  { %8889 = vmatprep.subr.bf16.mxu1 %v9377_v62 }
 0x40e   :  { %8671 = vmatpush3.bf16.msra.mxu0 %v9371_v19  ;;  %v10277_v19 = vld [vmem:[#allocation4_spill] sm:$0xff] }
 0x40f   :  { %8891 = vmatpush3.bf16.msra.mxu1 %v9377_v62  ;;  %8673 = vmatprep.subr.bf16.mxu0 %v9377_v62 }
 0x410   :  { %8893 = vmatprep.subr.bf16.mxu1 %v9379_v31 }
 0x412   :  { %8675 = vmatpush3.bf16.msra.mxu0 %v9377_v62 }
 0x413   :  { %8895 = vmatpush3.bf16.msra.mxu1 %v9379_v31  ;;  %8677 = vmatprep.subr.bf16.mxu0 %v9379_v31 }
 0x414   :  { %8897 = vmatprep.subr.bf16.mxu1 %v9381_v32 }
 0x416   :  { %7802 = vmatmul.mubr.f32.vlgmr.msra.gmra.mrb[10].mxu1 %v10003_v0  ;;  %8679 = vmatpush3.bf16.msra.mxu0 %v9379_v31 }
 0x417   :  { %8899 = vmatpush3.bf16.msra.mxu1 %v9381_v32  ;;  %7836 = vmatprep.mubr.f32.mxu1 %v10011_v49 }
 0x418   :  { %8681 = vmatprep.subr.bf16.mxu0 %v9381_v32  ;;  %8901 = vmatprep.subr.bf16.mxu1 %v9514_v12 }
 0x419   :  { %7550 = vmatmul.mubr.f32.vlgmr.msra.gmra.mrb[10].mxu0 %v10013_v55 }
 0x41a   :  { %8683 = vmatpush3.bf16.msra.mxu0 %v9381_v32  ;;  %7584 = vmatprep.mubr.f32.mxu0 %v10026_v53 }
 0x41b   :  { %8903 = vmatpush3.bf16.msra.mxu1 %v9514_v12  ;;  %8685 = vmatprep.subr.bf16.mxu0 %v9514_v12 }
 0x41c   :  { %8905 = vmatprep.subr.bf16.mxu1 %v9524_v20 }
 0x41e   :  { %8687 = vmatpush3.bf16.msra.mxu0 %v9514_v12  ;;  %v6006_v12 = vadd.f32 0.0001, %v10001_v27 }
 0x41f   :  { %8907 = vmatpush3.bf16.msra.mxu1 %v9524_v20  ;;  %8689 = vmatprep.subr.bf16.mxu0 %v9524_v20 }
 0x420   :  { %8909 = vmatprep.subr.bf16.mxu1 %v9536_v57 }
 0x422   :  { %8691 = vmatpush3.bf16.msra.mxu0 %v9524_v20 }
 0x423   :  { %8911 = vmatpush3.bf16.msra.mxu1 %v9536_v57  ;;  %8693 = vmatprep.subr.bf16.mxu0 %v9536_v57 }
 0x424   :  { %8913 = vmatprep.subr.bf16.mxu1 %v9554_v40 }
 0x426   :  { %8695 = vmatpush3.bf16.msra.mxu0 %v9536_v57 }
 0x427   :  { %8915 = vmatpush3.bf16.msra.mxu1 %v9554_v40  ;;  %8697 = vmatprep.subr.bf16.mxu0 %v9554_v40 }
 0x428   :  { %8917 = vmatprep.subr.bf16.mxu1 %v9383_v3 }
 0x42a   :  { %8699 = vmatpush3.bf16.msra.mxu0 %v9554_v40 }
 0x42b   :  { %8919 = vmatpush3.bf16.msra.mxu1 %v9383_v3  ;;  %8701 = vmatprep.subr.bf16.mxu0 %v9383_v3 }
 0x42c   :  { %8921 = vmatprep.subr.bf16.mxu1 %v9385_v52 }
 0x42e   :  { %8703 = vmatpush3.bf16.msra.mxu0 %v9383_v3 }
 0x42f   :  { %8923 = vmatpush3.bf16.msra.mxu1 %v9385_v52  ;;  %8705 = vmatprep.subr.bf16.mxu0 %v9385_v52 }
 0x430   :  { %8925 = vmatprep.subr.bf16.mxu1 %v9387_v48 }
 0x432   :  { %8707 = vmatpush3.bf16.msra.mxu0 %v9385_v52 }
 0x433   :  { %8927 = vmatpush3.bf16.msra.mxu1 %v9387_v48  ;;  %8709 = vmatprep.subr.bf16.mxu0 %v9387_v48 }
 0x434   :  { %8929 = vmatprep.subr.bf16.mxu1 %v9222_v34 }
 0x436   :  { %7837 = vmatmul.mubr.f32.vlgmr.msra.gmra.mrb[10].mxu1 %v10008_v56  ;;  %8711 = vmatpush3.bf16.msra.mxu0 %v9387_v48 }
 0x437   :  { %8931 = vmatpush3.bf16.msra.mxu1 %v9222_v34  ;;  %7871 = vmatprep.mubr.f32.mxu1 %v5381_v28 }
 0x438   :  { %8713 = vmatprep.subr.bf16.mxu0 %v9222_v34  ;;  %8933 = vmatprep.subr.bf16.mxu1 %v9256_v41 }
 0x439   :  { %7585 = vmatmul.mubr.f32.vlgmr.msra.gmra.mrb[10].mxu0 %v10020_v45 }
 0x43a   :  { %8715 = vmatpush3.bf16.msra.mxu0 %v9222_v34  ;;  %7619 = vmatprep.mubr.f32.mxu0 %v4193_v43 }
 0x43b   :  { %8935 = vmatpush3.bf16.msra.mxu1 %v9256_v41  ;;  %8717 = vmatprep.subr.bf16.mxu0 %v9256_v41 }
 0x43c   :  { %8937 = vmatprep.subr.bf16.mxu1 %v9277_v46 }
 0x43e   :  { %8719 = vmatpush3.bf16.msra.mxu0 %v9256_v41 }
 0x43f   :  { %8939 = vmatpush3.bf16.msra.mxu1 %v9277_v46  ;;  %8721 = vmatprep.subr.bf16.mxu0 %v9277_v46 }
 0x440   :  { %8941 = vmatprep.subr.bf16.mxu1 %v9299_v51 }
 0x442   :  { %8723 = vmatpush3.bf16.msra.mxu0 %v9277_v46 }
 0x443   :  { %8943 = vmatpush3.bf16.msra.mxu1 %v9299_v51  ;;  %8725 = vmatprep.subr.bf16.mxu0 %v9299_v51 }
 0x444   :  { %8945 = vmatprep.subr.bf16.mxu1 %v9311_v54 }
 0x446   :  { %8727 = vmatpush3.bf16.msra.mxu0 %v9299_v51 }
 0x447   :  { %8947 = vmatpush3.bf16.msra.mxu1 %v9311_v54  ;;  %8729 = vmatprep.subr.bf16.mxu0 %v9311_v54 }
 0x448   :  { %8949 = vmatprep.subr.bf16.mxu1 %v9327_v59 }
 0x44a   :  { %8731 = vmatpush3.bf16.msra.mxu0 %v9311_v54 }
 0x44b   :  { %8951 = vmatpush3.bf16.msra.mxu1 %v9327_v59  ;;  %8733 = vmatprep.subr.bf16.mxu0 %v9327_v59 }
 0x44c   :  { %8953 = vmatprep.subr.bf16.mxu1 %v9339_v2 }
 0x44e   :  { %8735 = vmatpush3.bf16.msra.mxu0 %v9327_v59 }
 0x44f   :  { %8955 = vmatpush3.bf16.msra.mxu1 %v9339_v2  ;;  %8737 = vmatprep.subr.bf16.mxu0 %v9339_v2 }
 0x450   :  { %8957 = vmatprep.subr.bf16.mxu1 %v9351_v8 }
 0x452   :  { %8739 = vmatpush3.bf16.msra.mxu0 %v9339_v2 }
 0x453   :  { %8959 = vmatpush3.bf16.msra.mxu1 %v9351_v8  ;;  %8741 = vmatprep.subr.bf16.mxu0 %v9351_v8 }
 0x454   :  { %8961 = vmatprep.subr.bf16.mxu1 %v9363_v16 }
 0x456   :  { %7872 = vmatmul.mubr.f32.vlgmr.msra.gmra.mrb[10].mxu1 %v5391_v35  ;;  %8743 = vmatpush3.bf16.msra.mxu0 %v9351_v8 }
 0x457   :  { %8963 = vmatpush3.bf16.msra.mxu1 %v9363_v16  ;;  %7906 = vmatprep.mubr.f32.mxu1 %v10005_v15 }
 0x458   :  { %8745 = vmatprep.subr.bf16.mxu0 %v9363_v16  ;;  %8965 = vmatprep.subr.bf16.mxu1 %v9436_v60 }
 0x459   :  { %7620 = vmatmul.mubr.f32.vlgmr.msra.gmra.mrb[10].mxu0 %v4203_v9 }
 0x45a   :  { %8747 = vmatpush3.bf16.msra.mxu0 %v9363_v16  ;;  %7654 = vmatprep.mubr.f32.mxu0 %v10016_v58  ;;  %v10275_v16 = vld [vmem:[#allocation2_spill] sm:$0xff] }
 0x45b   :  { %8967 = vmatpush3.bf16.msra.mxu1 %v9436_v60  ;;  %8749 = vmatprep.subr.bf16.mxu0 %v9436_v60 }
 0x45c   :  { %8969 = vmatprep.subr.bf16.mxu1 %v9464_v61 }
 0x45e   :  { %8751 = vmatpush3.bf16.msra.mxu0 %v9436_v60 }
 0x45f   :  { %8971 = vmatpush3.bf16.msra.mxu1 %v9464_v61  ;;  %8753 = vmatprep.subr.bf16.mxu0 %v9464_v61 }
 0x460   :  { %8973 = vmatprep.subr.bf16.mxu1 %v9470_v44 }
 0x462   :  { %8755 = vmatpush3.bf16.msra.mxu0 %v9464_v61 }
 0x463   :  { %8975 = vmatpush3.bf16.msra.mxu1 %v9470_v44  ;;  %8757 = vmatprep.subr.bf16.mxu0 %v9470_v44 }
 0x464   :  { %8977 = vmatprep.subr.bf16.mxu1 %v9483_v6 }
 0x466   :  { %8759 = vmatpush3.bf16.msra.mxu0 %v9470_v44 }
 0x467   :  { %8979 = vmatpush3.bf16.msra.mxu1 %v9483_v6  ;;  %8761 = vmatprep.subr.bf16.mxu0 %v9483_v6 }
 0x468   :  { %8981 = vmatprep.subr.bf16.mxu1 %v10275_v16 }
 0x46a   :  { %8763 = vmatpush3.bf16.msra.mxu0 %v9483_v6 }
 0x46b   :  { %8983 = vmatpush3.bf16.msra.mxu1 %v10275_v16  ;;  %8765 = vmatprep.subr.bf16.mxu0 %v10275_v16 }
 0x46c   :  { %8985 = vmatprep.subr.bf16.mxu1 %v10276_v23 }
 0x46e   :  { %8767 = vmatpush3.bf16.msra.mxu0 %v10275_v16 }
 0x46f   :  { %8987 = vmatpush3.bf16.msra.mxu1 %v10276_v23  ;;  %8769 = vmatprep.subr.bf16.mxu0 %v10276_v23 }
 0x470   :  { %8989 = vmatprep.subr.bf16.mxu1 %v10277_v19 }
 0x472   :  { %8771 = vmatpush3.bf16.msra.mxu0 %v10276_v23 }
 0x473   :  { %8991 = vmatpush3.bf16.msra.mxu1 %v10277_v19  ;;  %8773 = vmatprep.subr.bf16.mxu0 %v10277_v19 }
 0x474   :  { %8993 = vmatprep.subr.bf16.mxu1 %v9222_v34 }
 0x476   :  { %7907 = vmatmul.mubr.f32.vlgmr.msra.gmra.mrb[10].mxu1 %v10003_v0  ;;  %8775 = vmatpush3.bf16.msra.mxu0 %v10277_v19 }
 0x477   :  { %8995 = vmatpush3.bf16.msra.mxu1 %v9222_v34  ;;  %7941 = vmatprep.mubr.f32.mxu1 %v10005_v15 }
 0x478   :  { %8777 = vmatprep.subr.bf16.mxu0 %v9222_v34  ;;  %8997 = vmatprep.subr.bf16.mxu1 %v9256_v41 }
 0x479   :  { %7655 = vmatmul.mubr.f32.vlgmr.msra.gmra.mrb[10].mxu0 %v10013_v55 }
 0x47a   :  { %8779 = vmatpush3.bf16.msra.mxu0 %v9222_v34  ;;  %7689 = vmatprep.mubr.f32.mxu0 %v10016_v58 }
 0x47b   :  { %8999 = vmatpush3.bf16.msra.mxu1 %v9256_v41  ;;  %8781 = vmatprep.subr.bf16.mxu0 %v9256_v41 }
 0x47c   :  { %9001 = vmatprep.subr.bf16.mxu1 %v9277_v46 }
 0x47e   :  { %8783 = vmatpush3.bf16.msra.mxu0 %v9256_v41  ;;  %v5995_v41 = vmul.f32 2.0, %v9988_v5 }
 0x47f   :  { %9003 = vmatpush3.bf16.msra.mxu1 %v9277_v46  ;;  %8785 = vmatprep.subr.bf16.mxu0 %v9277_v46 }
 0x480   :  { %9005 = vmatprep.subr.bf16.mxu1 %v9299_v51  ;;  %v5997_v52 = vadd.f32 0.0001, %v5995_v41 }
 0x482   :  { %8787 = vmatpush3.bf16.msra.mxu0 %v9277_v46 }
 0x483   :  { %9007 = vmatpush3.bf16.msra.mxu1 %v9299_v51  ;;  %8789 = vmatprep.subr.bf16.mxu0 %v9299_v51 }
 0x484   :  { %9009 = vmatprep.subr.bf16.mxu1 %v9311_v54 }
 0x486   :  { %8791 = vmatpush3.bf16.msra.mxu0 %v9299_v51 }
 0x487   :  { %9011 = vmatpush3.bf16.msra.mxu1 %v9311_v54  ;;  %8793 = vmatprep.subr.bf16.mxu0 %v9311_v54 }
 0x488   :  { %9013 = vmatprep.subr.bf16.mxu1 %v9327_v59 }
 0x48a   :  { %8795 = vmatpush3.bf16.msra.mxu0 %v9311_v54  ;;  %v5994_v54 = vmul.f32 2.0, %v9993_v37 }
 0x48b   :  { %9015 = vmatpush3.bf16.msra.mxu1 %v9327_v59  ;;  %8797 = vmatprep.subr.bf16.mxu0 %v9327_v59 }
 0x48c   :  { %9017 = vmatprep.subr.bf16.mxu1 %v9339_v2  ;;  %v5996_v60 = vadd.f32 0.0001, %v5994_v54 }
 0x48e   :  { %8799 = vmatpush3.bf16.msra.mxu0 %v9327_v59 }
 0x48f   :  { %9019 = vmatpush3.bf16.msra.mxu1 %v9339_v2  ;;  %8801 = vmatprep.subr.bf16.mxu0 %v9339_v2 }
 0x490   :  { %9021 = vmatprep.subr.bf16.mxu1 %v9351_v8 }
 0x492   :  { %8803 = vmatpush3.bf16.msra.mxu0 %v9339_v2 }
 0x493   :  { %9023 = vmatpush3.bf16.msra.mxu1 %v9351_v8  ;;  %8805 = vmatprep.subr.bf16.mxu0 %v9351_v8 }
 0x496   :  { %7942 = vmatmul.mubr.f32.vlgmr.msra.gmra.mrb[10].mxu1 %v10003_v0  ;;  %8807 = vmatpush3.bf16.msra.mxu0 %v9351_v8 }
 0x499   :  { %7690 = vmatmul.mubr.f32.vlgmr.msra.gmra.mrb[10].mxu0 %v10013_v55 }
 0x569   :  { %v7943_v34 = vpop.f32.mrb[10].mxu1 }
 0x56a   :  { %v5993_v46 = vsub.f32 %v7943_v34, %v9988_v5  ;;  %v5972_v51 = vpop.f32.mrb[11].mxu1 }
 0x56b   :  { %v5992_v59 = vsub.f32 %v5972_v51, %v9993_v37 }
 0x56c   :  { %v5999_v2 = vmul.f32 2.0, %v5993_v46  ;;  %v7691_v62 = vpop.f32.mrb[10].mxu0 }
 0x56d   :  { %v5998_v31 = vmul.f32 2.0, %v5992_v59  ;;  %v5991_v32 = vsub.f32 %v7691_v62, %v9985_v30  ;;  %v4784_v3 = vpop.f32.mrb[11].mxu0 }
 0x56e   :  { %v6001_v8 = vadd.f32 0.0009, %v5999_v2  ;;  %v5990_v48 = vsub.f32 %v4784_v3, %v9990_v24 }
 0x56f   :  { %v6000_v38 = vadd.f32 0.0009, %v5998_v31  ;;  %v6009_v61 = vadd.f32 %v5991_v32, %v5989_v14 }
 0x570   :  { %v6003_v63 = vmul.f32 %v6001_v8, %v5997_v52  ;;  %v6008_v44 = vadd.f32 %v5990_v48, %v5988_v18 }
 0x571   :  { %v6002_v6 = vmul.f32 %v6000_v38, %v5996_v60  ;;  %v6011_v36 = vadd.f32 0.0009, %v6009_v61 }
 0x572   :  { %v6010_v20 = vadd.f32 0.0009, %v6008_v44 }
 0x573   :  { %v6013_v57 = vmul.f32 %v6011_v36, %v6007_v39 }
 0x574   :  { %v6012_v40 = vmul.f32 %v6010_v20, %v6006_v12 }
 0x575   :  { %9124 = vrcp.f32 %v6013_v57 }
 0x576   :  { %9126 = vrcp.f32 %v6012_v40 }
 0x57f   :  { %v9125_v30 = vpop.eup %9124 }
 0x580   :  { %v9127_v5 = vpop.eup %9126  ;;  %v6017_v7 = vmul.f32 %v9125_v30, %v6003_v63 }
 0x581   :  { %v6015_v10 = vmul.f32 %v9127_v5, %v6002_v6 }
 0x582   :  { %6019 = vst [vmem:[%s10245_s4 + $0x8] sm:$0xff] %v6017_v7 }
 0x583   :  { %6018 = vst [vmem:[%s10245_s4] sm:$0xff] %v6015_v10 }

</bundles_post_ra>
